<compile_context>
chip_gen: v5e
topology: v5e:2x2
jax: 0.10.0
libtpu: 0.0.40
codegen_flags: <defaults>
</compile_context>

<pallas_src>
import functools

import jax
import jax.numpy as jnp
import numpy as np
from jax import lax
from jax.experimental import pallas as pl
from jax.experimental.pallas import tpu as pltpu


def _round_up(n, m):
    return ((n + m - 1) // m) * m


# ----------------------------- Pallas kernel --------------------------------

def _convgru_kernel(mask_ref,                    # scalar prefetch (SMEM), (B_pad,) f32
                    xh_ref,                      # (1, C1, N) f32   [x | h] stacked on channels
                    w1_ref,                      # (3Ch, T*C1) mxu dtype  [[Wxg,Whg],[Wxc,0]]
                    whc_ref,                     # (Ch, T*Ch)  mxu dtype  (r*h -> cand)
                    bias_ref,                    # (3Ch, 1) f32  [b_gates ; b_can]
                    m1_ref,                      # (T*C1, N) compute dtype, 0/1 boundary mask
                    m2_ref,                      # (T*Ch, N) compute dtype, 0/1 boundary mask
                    mlane_ref,                   # (1, 1, N) f32 per-lane batch mask
                    o_ref,                       # (1, Ch, N)
                    *, W, Ch, Cin_p, kh, kw, Bblk, N, compute_dtype, mxu_dtype):
    g = pl.program_id(0)
    msum = mask_ref[g * Bblk]
    for j in range(1, Bblk):
        msum = msum + mask_ref[g * Bblk + j]

    taps = [(ky - kh // 2, kx - kw // 2) for ky in range(kh) for kx in range(kw)]

    def im2col(a, boundary):
        # a: (C, N).  Each tap is one XLU lane rotation of the whole slab; the
        # boundary mask zeroes every wrapped / out-of-image column (including
        # the cross-batch wrap introduced by lane-folding Bblk batches).
        parts = []
        for dy, dx in taps:
            s = dy * W + dx
            parts.append(a if s == 0 else pltpu.roll(a, shift=(-s) % N, axis=1))
        col = jnp.concatenate(parts, axis=0)     # (T*C, N), sublane aligned
        return col * boundary

    # Fast path: every batch in this block has mask == 0 -> h_next == h exactly.
    @pl.when(msum == 0.0)
    def _():
        o_ref[0] = xh_ref[0][Cin_p:, :].astype(o_ref.dtype)

    @pl.when(msum != 0.0)
    def _():
        xh = xh_ref[0]                                         # (C1, N) f32
        h = xh[Cin_p:, :].astype(jnp.float32)                  # (Ch, N)

        # One matmul for gates + candidate-x-part (K = T*(Cin_p+Ch)).
        col1 = im2col(xh.astype(compute_dtype), m1_ref[...])   # (T*C1, N)
        out1 = (jnp.dot(w1_ref[...], col1.astype(mxu_dtype),
                        preferred_element_type=jnp.float32)
                + bias_ref[...])                               # (3Ch, N)

        reset_gate = jax.nn.sigmoid(out1[:Ch, :])
        update_gate = jax.nn.sigmoid(out1[Ch:2 * Ch, :])

        # Candidate conv (second and last matmul).
        rh = (reset_gate * h).astype(compute_dtype)
        col2 = im2col(rh, m2_ref[...])                         # (T*Ch, N)
        cand = jnp.tanh(out1[2 * Ch:, :]
                        + jnp.dot(whc_ref[...], col2.astype(mxu_dtype),
                                  preferred_element_type=jnp.float32))

        h_next = (1.0 - update_gate) * h + update_gate * cand
        ml = mlane_ref[0]                                      # (1, N)
        h_next = ml * h_next + (1.0 - ml) * h                  # per-batch mask blend
        o_ref[0] = h_next.astype(o_ref.dtype)


# ------------------------------- Wrapper -------------------------------------

def conv_gru_cell(x_nchw, h_nchw, mask, w_gates, b_gates, w_can, b_can,
                  kernel_size=(3, 3), *,
                  compute_dtype=jnp.bfloat16, mxu_dtype=jnp.bfloat16,
                  num_blocks=None):
    """ConvGRUCell forward.

    x_nchw: (B, Cin, H, W), h_nchw: (B, Ch, H, W), mask: (B,) floats
    (PyTorch semantics: h_next = m*h_next + (1-m)*h_cur, broadcast over C,H,W).
    Conv weights are HWIO (kh, kw, Cin+Ch, cout), biases (1, cout).
    Defaults (bf16 shuffle + bf16 MXU) target v6e/v7x; on v5e use
    compute_dtype=jnp.float32, mxu_dtype=jnp.bfloat16 and num_blocks=1.
    """
    kh, kw = kernel_size
    assert kh % 2 == 1 and kw % 2 == 1, "only odd kernel sizes give 'same' padding"
    B, Cin, H, W = x_nchw.shape
    Ch = h_nchw.shape[1]
    P = H * W
    T = kh * kw
    Cin_p = _round_up(Cin, 8)          # sublane-align per-tap im2col pieces
    C1 = Cin_p + Ch

    if num_blocks is None:
        num_blocks = min(B, 2)         # 2 blocks feed both v7x TensorCores
    Bblk = -(-B // num_blocks)
    B_pad = num_blocks * Bblk
    N = Bblk * P                       # lane width per block (multiple of 128)

    # Activations: NCHW -> (B, C, H*W), stack x|h on channels, pad batch,
    # lane-fold Bblk batches per block.  Pure reshapes + one tiny XLA transpose.
    x = x_nchw.reshape(B, Cin, P).astype(jnp.float32)
    if Cin_p > Cin:
        x = jnp.pad(x, ((0, 0), (0, Cin_p - Cin), (0, 0)))
    h = h_nchw.reshape(B, Ch, P).astype(jnp.float32)
    xh = jnp.concatenate([x, h], axis=1)                      # (B, C1, P)
    mask_f = jnp.asarray(mask, jnp.float32).reshape(B)
    if B_pad > B:
        xh = jnp.pad(xh, ((0, B_pad - B), (0, 0), (0, 0)))
        mask_f = jnp.pad(mask_f, (0, B_pad - B))
    xh_blk = xh.reshape(num_blocks, Bblk, C1, P).transpose(0, 2, 1, 3) \
               .reshape(num_blocks, C1, N)
    mlane = jnp.broadcast_to(mask_f.reshape(num_blocks, Bblk, 1),
                             (num_blocks, Bblk, P)).reshape(num_blocks, 1, N)

    # Weights: split input channels (x | h), pad x channels, build the merged
    # block weight [[Wx_gates, Wh_gates], [Wx_cand, 0]] with K tap-major and
    # per-tap [x channels | h channels] ordering (matches im2col of stacked xh).
    def split_in(w):
        wx, wh = w[:, :, :Cin, :], w[:, :, Cin:, :]
        if Cin_p > Cin:
            wx = jnp.pad(wx, ((0, 0), (0, 0), (0, Cin_p - Cin), (0, 0)))
        return wx, wh

    wgx, wgh = split_in(jnp.asarray(w_gates, jnp.float32))    # -> 2Ch outputs
    wcx, wch = split_in(jnp.asarray(w_can, jnp.float32))      # -> Ch outputs
    w1 = jnp.concatenate(
        [jnp.concatenate([wgx, wgh], axis=2),
         jnp.concatenate([wcx, jnp.zeros_like(wch)], axis=2)], axis=3)  # (kh,kw,C1,3Ch)
    w1_t = w1.reshape(T * C1, 3 * Ch).T.astype(mxu_dtype)               # (3Ch, T*C1)
    whc_t = wch.reshape(T * Ch, Ch).T.astype(mxu_dtype)                 # (Ch, T*Ch)
    bias = jnp.concatenate([jnp.asarray(b_gates, jnp.float32).reshape(-1),
                            jnp.asarray(b_can, jnp.float32).reshape(-1)]
                           ).reshape(3 * Ch, 1)                         # (3Ch, 1)

    # Precomputed 0/1 boundary masks (host numpy): per tap, positions whose
    # window leaves the image row/column (== exactly the positions a roll by
    # dy*W+dx corrupts).  Tiled over the Bblk lane-folded batches, repeated
    # over channels, shipped in compute_dtype (bf16 halves resident VMEM).
    yy = np.arange(H).reshape(H, 1)
    xx = np.arange(W).reshape(1, W)
    taps = [(ky - kh // 2, kx - kw // 2) for ky in range(kh) for kx in range(kw)]
    tapm = np.stack([((yy + dy >= 0) & (yy + dy < H) &
                      (xx + dx >= 0) & (xx + dx < W)).reshape(P)
                     for dy, dx in taps], axis=0).astype(np.float32)    # (T, P)
    tapN = np.tile(tapm, (1, Bblk))                                     # (T, N)
    m1 = jnp.asarray(np.repeat(tapN, C1, axis=0), compute_dtype)        # (T*C1, N)
    m2 = jnp.asarray(np.repeat(tapN, Ch, axis=0), compute_dtype)        # (T*Ch, N)

    kernel = functools.partial(_convgru_kernel, W=W, Ch=Ch, Cin_p=Cin_p,
                               kh=kh, kw=kw, Bblk=Bblk, N=N,
                               compute_dtype=compute_dtype, mxu_dtype=mxu_dtype)

    grid_spec = pltpu.PrefetchScalarGridSpec(
        num_scalar_prefetch=1,
        grid=(num_blocks,),
        in_specs=[
            pl.BlockSpec((1, C1, N), lambda g, m: (g, 0, 0)),
            pl.BlockSpec((3 * Ch, T * C1), lambda g, m: (0, 0)),
            pl.BlockSpec((Ch, T * Ch), lambda g, m: (0, 0)),
            pl.BlockSpec((3 * Ch, 1), lambda g, m: (0, 0)),
            pl.BlockSpec((T * C1, N), lambda g, m: (0, 0)),
            pl.BlockSpec((T * Ch, N), lambda g, m: (0, 0)),
            pl.BlockSpec((1, 1, N), lambda g, m: (g, 0, 0)),
        ],
        out_specs=pl.BlockSpec((1, Ch, N), lambda g, m: (g, 0, 0)),
    )

    out = pl.pallas_call(
        kernel,
        grid_spec=grid_spec,
        out_shape=jax.ShapeDtypeStruct((num_blocks, Ch, N), h_nchw.dtype),
        compiler_params=pltpu.CompilerParams(
            dimension_semantics=("parallel",)),
    )(mask_f, xh_blk, w1_t, whc_t, bias, m1, m2, mlane)

    # Undo the lane fold, drop batch padding.
    h_next = out.reshape(num_blocks, Ch, Bblk, P).transpose(0, 2, 1, 3) \
                .reshape(B_pad, Ch, P)[:B]
    return h_next.reshape(B, Ch, H, W)


# --------------------------- Pure-JAX reference ------------------------------

def _conv_same_ref(inp_nhwc, w_hwio, b):
    out = lax.conv_general_dilated(
        inp_nhwc, w_hwio, window_strides=(1, 1), padding="SAME",
        dimension_numbers=("NHWC", "HWIO", "NHWC"))
    return out + b.reshape(1, 1, 1, -1)


def conv_gru_cell_ref(x_nchw, h_nchw, mask, w_gates, b_gates, w_can, b_can):
    Ch = h_nchw.shape[1]
    x = jnp.transpose(x_nchw, (0, 2, 3, 1))
    h = jnp.transpose(h_nchw, (0, 2, 3, 1))
    combined = jnp.concatenate([x, h], axis=-1)
    gates = _conv_same_ref(combined, w_gates, b_gates)
    reset_gate = jax.nn.sigmoid(gates[..., :Ch])
    update_gate = jax.nn.sigmoid(gates[..., Ch:])
    combined2 = jnp.concatenate([x, reset_gate * h], axis=-1)
    cnm = jnp.tanh(_conv_same_ref(combined2, w_can, b_can))
    h_next = (1.0 - update_gate) * h + update_gate * cnm
    m = mask.reshape(-1, 1, 1, 1)
    h_next = m * h_next + (1.0 - m) * h
    return jnp.transpose(h_next, (0, 3, 1, 2))


# ---------------------------------- Main --------------------------------------

if __name__ == "__main__":
    # Small config consistent with the PyTorch module's forward.
    B, Cin, Ch, H, W = 3, 4, 8, 16, 16
    kh, kw = 3, 3
    Ct = Cin + Ch

    key = jax.random.PRNGKey(0)
    k = jax.random.split(key, 6)

    bound = 1.0 / np.sqrt(Ct * kh * kw)
    w_gates = jax.random.uniform(k[0], (kh, kw, Ct, 2 * Ch), jnp.float32,
                                 -bound, bound)
    b_gates = jax.random.uniform(k[1], (1, 2 * Ch), jnp.float32, -bound, bound)
    w_can = jax.random.uniform(k[2], (kh, kw, Ct, Ch), jnp.float32,
                               -bound, bound)
    b_can = jax.random.uniform(k[3], (1, Ch), jnp.float32, -bound, bound)

    x = jax.random.normal(k[4], (B, Cin, H, W), jnp.float32)
    h_cur = jax.random.normal(k[5], (B, Ch, H, W), jnp.float32)
    # Unmasked (1), masked (0), and fractional blend (0.5); B=3 also exercises
    # batch folding with one padded batch.
    mask = jnp.array([1.0, 0.0, 0.5], dtype=jnp.float32)

    h_ref = conv_gru_cell_ref(x, h_cur, mask, w_gates, b_gates, w_can, b_can)

    # f32 shuffle + f32 MXU: tight check against the XLA reference.
    h_f32 = conv_gru_cell(x, h_cur, mask, w_gates, b_gates, w_can, b_can,
                          kernel_size=(kh, kw),
                          compute_dtype=jnp.float32, mxu_dtype=jnp.float32)
    h_f32 = jax.block_until_ready(h_f32)
    np.testing.assert_allclose(np.asarray(h_f32), np.asarray(h_ref),
                               rtol=1e-5, atol=1e-5)

    # Default bf16 path (early bf16 shuffle + bf16 MXU operands, f32 accum and
    # f32 element-wise math) -- looser tolerance from bf16 operand rounding.
    h_bf16 = conv_gru_cell(x, h_cur, mask, w_gates, b_gates, w_can, b_can,
                           kernel_size=(kh, kw))
    h_bf16 = jax.block_until_ready(h_bf16)
    np.testing.assert_allclose(np.asarray(h_bf16), np.asarray(h_ref),
                               rtol=0.0, atol=5e-2)

    # All-zero mask exercises the per-block fast path: output must equal h exactly.
    h_zero = conv_gru_cell(x, h_cur, jnp.zeros((B,), jnp.float32),
                           w_gates, b_gates, w_can, b_can, kernel_size=(kh, kw))
    h_zero = jax.block_until_ready(h_zero)
    np.testing.assert_array_equal(np.asarray(h_zero), np.asarray(h_cur))

    print("KERNEL_OK")
</pallas_src>

<mosaic_0001>
module attributes {stable_mosaic.version = 11 : i64} {
  func.func @_convgru_kernel(%arg0: i32, %arg1: memref<4xf32, #tpu.memory_space<smem>>, %arg2: memref<1x16x512xf32, #tpu.memory_space<vmem>>, %arg3: memref<24x144xf32, #tpu.memory_space<vmem>>, %arg4: memref<8x72xf32, #tpu.memory_space<vmem>>, %arg5: memref<24x1xf32, #tpu.memory_space<vmem>>, %arg6: memref<144x512xf32, #tpu.memory_space<vmem>>, %arg7: memref<72x512xf32, #tpu.memory_space<vmem>>, %arg8: memref<1x1x512xf32, #tpu.memory_space<vmem>>, %arg9: memref<1x8x512xf32, #tpu.memory_space<vmem>>) attributes {dimension_semantics = [#tpu.dimension_semantics<parallel>], iteration_bounds = array<i64: 2>, scalar_prefetch = 1 : i64, scratch_operands = 0 : i64, tpu.core_type = #tpu.core_type<tc>, window_params = [{transform_indices = @transform_0, window_bounds = array<i64: 1, 16, 512>}, {pipeline_mode = #tpu.pipeline_mode<synchronous>, transform_indices = @transform_1, window_bounds = array<i64: 24, 144>}, {pipeline_mode = #tpu.pipeline_mode<synchronous>, transform_indices = @transform_2, window_bounds = array<i64: 8, 72>}, {pipeline_mode = #tpu.pipeline_mode<synchronous>, transform_indices = @transform_3, window_bounds = array<i64: 24, 1>}, {pipeline_mode = #tpu.pipeline_mode<synchronous>, transform_indices = @transform_4, window_bounds = array<i64: 144, 512>}, {pipeline_mode = #tpu.pipeline_mode<synchronous>, transform_indices = @transform_5, window_bounds = array<i64: 72, 512>}, {transform_indices = @transform_6, window_bounds = array<i64: 1, 1, 512>}, {transform_indices = @transform_7, window_bounds = array<i64: 1, 8, 512>}]} {
    %c2_i32 = arith.constant 2 : i32
    %0 = arith.muli %arg0, %c2_i32 : i32
    %1 = arith.index_cast %0 : i32 to index
    %2 = memref.load %arg1[%1] : memref<4xf32, #tpu.memory_space<smem>>
    %c2_i32_0 = arith.constant 2 : i32
    %3 = arith.muli %arg0, %c2_i32_0 : i32
    %c1_i32 = arith.constant 1 : i32
    %4 = arith.addi %3, %c1_i32 : i32
    %5 = arith.index_cast %4 : i32 to index
    %6 = memref.load %arg1[%5] : memref<4xf32, #tpu.memory_space<smem>>
    %7 = arith.addf %2, %6 : f32
    %cst = arith.constant 0.000000e+00 : f32
    %8 = arith.cmpf oeq, %7, %cst : f32
    %9 = arith.extui %8 : i1 to i32
    %c0_i32 = arith.constant 0 : i32
    %10 = arith.cmpi ne, %9, %c0_i32 : i32
    scf.if %10 {
      %c0 = arith.constant 0 : index
      %c0_3 = arith.constant 0 : index
      %c0_4 = arith.constant 0 : index
      %14 = vector.load %arg2[%c0, %c0_3, %c0_4] : memref<1x16x512xf32, #tpu.memory_space<vmem>>, vector<1x16x512xf32>
      %15 = vector.shape_cast %14 : vector<1x16x512xf32> to vector<16x512xf32>
      %16 = vector.extract_strided_slice %15 {offsets = [8, 0], sizes = [8, 512], strides = [1, 1]} : vector<16x512xf32> to vector<8x512xf32>
      %c0_5 = arith.constant 0 : index
      %c0_6 = arith.constant 0 : index
      %c0_7 = arith.constant 0 : index
      %17 = vector.load %arg9[%c0_5, %c0_6, %c0_7] : memref<1x8x512xf32, #tpu.memory_space<vmem>>, vector<1x8x512xf32>
      %18 = vector.shape_cast %17 : vector<1x8x512xf32> to vector<8x512xf32>
      %19 = vector.shape_cast %16 : vector<8x512xf32> to vector<1x8x512xf32>
      tpu.vector_store %arg9[%c0_5, %c0_6, %c0_7], %19 {strides = array<i32>} : memref<1x8x512xf32, #tpu.memory_space<vmem>>, vector<1x8x512xf32>,
    } else {
    }
    %cst_1 = arith.constant 0.000000e+00 : f32
    %11 = arith.cmpf one, %7, %cst_1 : f32
    %12 = arith.extui %11 : i1 to i32
    %c0_i32_2 = arith.constant 0 : i32
    %13 = arith.cmpi ne, %12, %c0_i32_2 : i32
    scf.if %13 {
      %c0 = arith.constant 0 : index
      %c0_3 = arith.constant 0 : index
      %c0_4 = arith.constant 0 : index
      %14 = vector.load %arg2[%c0, %c0_3, %c0_4] : memref<1x16x512xf32, #tpu.memory_space<vmem>>, vector<1x16x512xf32>
      %15 = vector.shape_cast %14 : vector<1x16x512xf32> to vector<16x512xf32>
      %16 = vector.extract_strided_slice %15 {offsets = [8, 0], sizes = [8, 512], strides = [1, 1]} : vector<16x512xf32> to vector<8x512xf32>
      %c0_5 = arith.constant 0 : index
      %c0_6 = arith.constant 0 : index
      %17 = vector.load %arg6[%c0_5, %c0_6] : memref<144x512xf32, #tpu.memory_space<vmem>>, vector<144x512xf32>
      %c17_i32 = arith.constant 17 : i32
      %18 = tpu.dynamic_rotate %15 by %c17_i32 dim 1 : vector<16x512xf32>, i32 -> vector<16x512xf32>
      %c16_i32 = arith.constant 16 : i32
      %19 = tpu.dynamic_rotate %15 by %c16_i32 dim 1 : vector<16x512xf32>, i32 -> vector<16x512xf32>
      %c15_i32 = arith.constant 15 : i32
      %20 = tpu.dynamic_rotate %15 by %c15_i32 dim 1 : vector<16x512xf32>, i32 -> vector<16x512xf32>
      %c1_i32_7 = arith.constant 1 : i32
      %21 = tpu.dynamic_rotate %15 by %c1_i32_7 dim 1 : vector<16x512xf32>, i32 -> vector<16x512xf32>
      %c511_i32 = arith.constant 511 : i32
      %22 = tpu.dynamic_rotate %15 by %c511_i32 dim 1 : vector<16x512xf32>, i32 -> vector<16x512xf32>
      %c497_i32 = arith.constant 497 : i32
      %23 = tpu.dynamic_rotate %15 by %c497_i32 dim 1 : vector<16x512xf32>, i32 -> vector<16x512xf32>
      %c496_i32 = arith.constant 496 : i32
      %24 = tpu.dynamic_rotate %15 by %c496_i32 dim 1 : vector<16x512xf32>, i32 -> vector<16x512xf32>
      %c495_i32 = arith.constant 495 : i32
      %25 = tpu.dynamic_rotate %15 by %c495_i32 dim 1 : vector<16x512xf32>, i32 -> vector<16x512xf32>
      %26 = tpu.concatenate %18, %19, %20, %21, %15, %22, %23, %24, %25 in 0 : vector<16x512xf32>, vector<16x512xf32>, vector<16x512xf32>, vector<16x512xf32>, vector<16x512xf32>, vector<16x512xf32>, vector<16x512xf32>, vector<16x512xf32>, vector<16x512xf32> -> vector<144x512xf32>
      %27 = arith.mulf %26, %17 : vector<144x512xf32>
      %c0_8 = arith.constant 0 : index
      %c0_9 = arith.constant 0 : index
      %28 = vector.load %arg3[%c0_8, %c0_9] : memref<24x144xf32, #tpu.memory_space<vmem>>, vector<24x144xf32>
      %cst_10 = arith.constant dense<0.000000e+00> : vector<24x512xf32>
      %29 = tpu.matmul %28, %27, %cst_10 {dimension_numbers = #tpu.dot_dimension_numbers<[1], [0], [0], [1], [0, 0, 1, 1], [], []>} : vector<24x144xf32>, vector<144x512xf32>, vector<24x512xf32> -> vector<24x512xf32>
      %c0_11 = arith.constant 0 : index
      %c0_12 = arith.constant 0 : index
      %30 = vector.load %arg5[%c0_11, %c0_12] : memref<24x1xf32, #tpu.memory_space<vmem>>, vector<24x1xf32>
      %31 = vector.broadcast %30 : vector<24x1xf32> to vector<24x512xf32>
      %32 = arith.addf %29, %31 : vector<24x512xf32>
      %33 = vector.extract_strided_slice %32 {offsets = [0, 0], sizes = [8, 512], strides = [1, 1]} : vector<24x512xf32> to vector<8x512xf32>
      %34 = arith.negf %33 : vector<8x512xf32>
      %35 = math.exp %34 : vector<8x512xf32>
      %cst_13 = arith.constant 1.000000e+00 : f32
      %36 = vector.broadcast %cst_13 : f32 to vector<8x512xf32>
      %37 = arith.addf %36, %35 : vector<8x512xf32>
      %38 = arith.divf %36, %37 : vector<8x512xf32>
      %39 = vector.extract_strided_slice %32 {offsets = [8, 0], sizes = [8, 512], strides = [1, 1]} : vector<24x512xf32> to vector<8x512xf32>
      %40 = arith.negf %39 : vector<8x512xf32>
      %41 = math.exp %40 : vector<8x512xf32>
      %cst_14 = arith.constant 1.000000e+00 : f32
      %42 = vector.broadcast %cst_14 : f32 to vector<8x512xf32>
      %43 = arith.addf %42, %41 : vector<8x512xf32>
      %44 = arith.divf %42, %43 : vector<8x512xf32>
      %45 = arith.mulf %38, %16 : vector<8x512xf32>
      %c0_15 = arith.constant 0 : index
      %c0_16 = arith.constant 0 : index
      %46 = vector.load %arg7[%c0_15, %c0_16] : memref<72x512xf32, #tpu.memory_space<vmem>>, vector<72x512xf32>
      %c17_i32_17 = arith.constant 17 : i32
      %47 = tpu.dynamic_rotate %45 by %c17_i32_17 dim 1 : vector<8x512xf32>, i32 -> vector<8x512xf32>
      %c16_i32_18 = arith.constant 16 : i32
      %48 = tpu.dynamic_rotate %45 by %c16_i32_18 dim 1 : vector<8x512xf32>, i32 -> vector<8x512xf32>
      %c15_i32_19 = arith.constant 15 : i32
      %49 = tpu.dynamic_rotate %45 by %c15_i32_19 dim 1 : vector<8x512xf32>, i32 -> vector<8x512xf32>
      %c1_i32_20 = arith.constant 1 : i32
      %50 = tpu.dynamic_rotate %45 by %c1_i32_20 dim 1 : vector<8x512xf32>, i32 -> vector<8x512xf32>
      %c511_i32_21 = arith.constant 511 : i32
      %51 = tpu.dynamic_rotate %45 by %c511_i32_21 dim 1 : vector<8x512xf32>, i32 -> vector<8x512xf32>
      %c497_i32_22 = arith.constant 497 : i32
      %52 = tpu.dynamic_rotate %45 by %c497_i32_22 dim 1 : vector<8x512xf32>, i32 -> vector<8x512xf32>
      %c496_i32_23 = arith.constant 496 : i32
      %53 = tpu.dynamic_rotate %45 by %c496_i32_23 dim 1 : vector<8x512xf32>, i32 -> vector<8x512xf32>
      %c495_i32_24 = arith.constant 495 : i32
      %54 = tpu.dynamic_rotate %45 by %c495_i32_24 dim 1 : vector<8x512xf32>, i32 -> vector<8x512xf32>
      %55 = tpu.concatenate %47, %48, %49, %50, %45, %51, %52, %53, %54 in 0 : vector<8x512xf32>, vector<8x512xf32>, vector<8x512xf32>, vector<8x512xf32>, vector<8x512xf32>, vector<8x512xf32>, vector<8x512xf32>, vector<8x512xf32>, vector<8x512xf32> -> vector<72x512xf32>
      %56 = arith.mulf %55, %46 : vector<72x512xf32>
      %57 = vector.extract_strided_slice %32 {offsets = [16, 0], sizes = [8, 512], strides = [1, 1]} : vector<24x512xf32> to vector<8x512xf32>
      %c0_25 = arith.constant 0 : index
      %c0_26 = arith.constant 0 : index
      %58 = vector.load %arg4[%c0_25, %c0_26] : memref<8x72xf32, #tpu.memory_space<vmem>>, vector<8x72xf32>
      %cst_27 = arith.constant dense<0.000000e+00> : vector<8x512xf32>
      %59 = tpu.matmul %58, %56, %cst_27 {dimension_numbers = #tpu.dot_dimension_numbers<[1], [0], [0], [1], [0, 0, 1, 1], [], []>} : vector<8x72xf32>, vector<72x512xf32>, vector<8x512xf32> -> vector<8x512xf32>
      %60 = arith.addf %57, %59 : vector<8x512xf32>
      %61 = math.tanh %60 : vector<8x512xf32>
      %cst_28 = arith.constant 1.000000e+00 : f32
      %62 = vector.broadcast %cst_28 : f32 to vector<8x512xf32>
      %63 = arith.subf %62, %44 : vector<8x512xf32>
      %64 = arith.mulf %63, %16 : vector<8x512xf32>
      %65 = arith.mulf %44, %61 : vector<8x512xf32>
      %66 = arith.addf %64, %65 : vector<8x512xf32>
      %c0_29 = arith.constant 0 : index
      %c0_30 = arith.constant 0 : index
      %c0_31 = arith.constant 0 : index
      %67 = vector.load %arg8[%c0_29, %c0_30, %c0_31] : memref<1x1x512xf32, #tpu.memory_space<vmem>>, vector<1x1x512xf32>
      %68 = vector.shape_cast %67 : vector<1x1x512xf32> to vector<1x512xf32>
      %69 = vector.broadcast %68 : vector<1x512xf32> to vector<8x512xf32>
      %70 = arith.mulf %69, %66 : vector<8x512xf32>
      %cst_32 = arith.constant 1.000000e+00 : f32
      %71 = vector.broadcast %cst_32 : f32 to vector<1x512xf32>
      %72 = arith.subf %71, %68 : vector<1x512xf32>
      %73 = vector.broadcast %72 : vector<1x512xf32> to vector<8x512xf32>
      %74 = arith.mulf %73, %16 : vector<8x512xf32>
      %75 = arith.addf %70, %74 : vector<8x512xf32>
      %c0_33 = arith.constant 0 : index
      %c0_34 = arith.constant 0 : index
      %c0_35 = arith.constant 0 : index
      %76 = vector.load %arg9[%c0_33, %c0_34, %c0_35] : memref<1x8x512xf32, #tpu.memory_space<vmem>>, vector<1x8x512xf32>
      %77 = vector.shape_cast %76 : vector<1x8x512xf32> to vector<8x512xf32>
      %78 = vector.shape_cast %75 : vector<8x512xf32> to vector<1x8x512xf32>
      tpu.vector_store %arg9[%c0_33, %c0_34, %c0_35], %78 {strides = array<i32>} : memref<1x8x512xf32, #tpu.memory_space<vmem>>, vector<1x8x512xf32>,
    } else {
    }
    return
  }
  func.func @transform_0(%arg0: i32, %arg1: memref<4xf32, #tpu.memory_space<smem>>) -> (i32, i32, i32) {
    %c0_i32 = arith.constant 0 : i32
    %c0_i32_0 = arith.constant 0 : i32
    %c0_i32_1 = arith.constant 0 : i32
    return %arg0, %c0_i32, %c0_i32_0 : i32, i32, i32
  }
  func.func @transform_1(%arg0: i32, %arg1: memref<4xf32, #tpu.memory_space<smem>>) -> (i32, i32) {
    %c0_i32 = arith.constant 0 : i32
    %c0_i32_0 = arith.constant 0 : i32
    %c0_i32_1 = arith.constant 0 : i32
    return %c0_i32, %c0_i32_0 : i32, i32
  }
  func.func @transform_2(%arg0: i32, %arg1: memref<4xf32, #tpu.memory_space<smem>>) -> (i32, i32) {
    %c0_i32 = arith.constant 0 : i32
    %c0_i32_0 = arith.constant 0 : i32
    %c0_i32_1 = arith.constant 0 : i32
    return %c0_i32, %c0_i32_0 : i32, i32
  }
  func.func @transform_3(%arg0: i32, %arg1: memref<4xf32, #tpu.memory_space<smem>>) -> (i32, i32) {
    %c0_i32 = arith.constant 0 : i32
    %c0_i32_0 = arith.constant 0 : i32
    %c0_i32_1 = arith.constant 0 : i32
    return %c0_i32, %c0_i32_0 : i32, i32
  }
  func.func @transform_4(%arg0: i32, %arg1: memref<4xf32, #tpu.memory_space<smem>>) -> (i32, i32) {
    %c0_i32 = arith.constant 0 : i32
    %c0_i32_0 = arith.constant 0 : i32
    %c0_i32_1 = arith.constant 0 : i32
    return %c0_i32, %c0_i32_0 : i32, i32
  }
  func.func @transform_5(%arg0: i32, %arg1: memref<4xf32, #tpu.memory_space<smem>>) -> (i32, i32) {
    %c0_i32 = arith.constant 0 : i32
    %c0_i32_0 = arith.constant 0 : i32
    %c0_i32_1 = arith.constant 0 : i32
    return %c0_i32, %c0_i32_0 : i32, i32
  }
  func.func @transform_6(%arg0: i32, %arg1: memref<4xf32, #tpu.memory_space<smem>>) -> (i32, i32, i32) {
    %c0_i32 = arith.constant 0 : i32
    %c0_i32_0 = arith.constant 0 : i32
    %c0_i32_1 = arith.constant 0 : i32
    return %arg0, %c0_i32, %c0_i32_0 : i32, i32, i32
  }
  func.func @transform_7(%arg0: i32, %arg1: memref<4xf32, #tpu.memory_space<smem>>) -> (i32, i32, i32) {
    %c0_i32 = arith.constant 0 : i32
    %c0_i32_0 = arith.constant 0 : i32
    %c0_i32_1 = arith.constant 0 : i32
    return %arg0, %c0_i32, %c0_i32_0 : i32, i32, i32
  }
}

</mosaic_0001>

<bundles_post_ra>
// kernel: tpu_custom_call.1
= control target key start
LH: loop header
LB: loop body
LE: loop exit
PB: predicated region body
PF: predicated region fallthrough
CT: control target
= control target key end

     0   :  { %s1985_s30 = smov [#allocation3]   ;;  %s3131_s0 = inlined_call_operand.vmem [shape: f32[4], index: 0, kind: input, shape index: {}]   ;;  %s3132_s1 = inlined_call_operand.hbm [shape: f32[2,16,512], index: 1, kind: input, shape index: {}]   ;;  %s3133_s2 = inlined_call_operand.hbm [shape: f32[24,144], index: 2, kind: input, shape index: {}]   ;;  %s3134_s3 = inlined_call_operand.vmem [shape: f32[8,72], index: 3, kind: input, shape index: {}]   ;;  %s3135_s4 = inlined_call_operand.vmem [shape: f32[24,1], index: 4, kind: input, shape index: {}]   ;;  %s3136_s5 = inlined_call_operand.hbm [shape: f32[144,512], index: 5, kind: input, shape index: {}]   ;;  %s3137_s6 = inlined_call_operand.hbm [shape: f32[72,512], index: 6, kind: input, shape index: {}]   ;;  %s3138_s7 = inlined_call_operand.vmem [shape: f32[2,1,512], index: 7, kind: input, shape index: {}]   ;;  %s3139_s8 = inlined_call_operand.hbm [shape: f32[2,8,512], index: 8, kind: output, shape index: {}]  }
   0x1   :  { %3142 = sst [smem:[#allocation18_spill]] %s3133_s2  ;;  %s14_s29 = sshll.u32 %s3131_s0, 4  ;;  %s15_s29 = int_to_ptr.vmem [resolvable:$true] %s14_s29 }
   0x2   :  { %17 = dma.vmem_to_smem %s15_s29, 16, %s1985_s30, [#allocation2] }
   0x3   :  { %1951 = dma.done.wait [#allocation2], 16 }
   0x4   :  { %1952 = vsyncadd [#allocation2], 4294967280 }
   0x5   :  { %20 = sfence }
   0x6   :  { %21 = vsyncpa [#allocation5], 0 }
   0x7   :  { %23 = vsyncpa [#allocation5 + $0x1], 0 }
   0x8   :  { %24 = vsyncpa [#allocation8], 0 }
   0x9   :  { %25 = vsyncpa [#allocation11], 0 }
   0xa   :  { %26 = vsyncpa [#allocation6], 0 }
   0xb   :  { %28 = vsyncpa [#allocation6 + $0x1], 0  ;;  %s2050_s9 = smov 0   ;;  %s2052_s10 = smov 0  }
   0xc   :  { %s2054_s11 = smov 0   ;;  %s2056_s12 = smov 0  }
   0xd LB: > { %s2071_s0 = sadd.s32 4294967295, %s1983_s12   ;;  %s1589_s13 = sadd.s32 4294967294, %s1983_s12   ;;  %s1983_s12 = sphi %s2056_s12, %s3162_s12   ;;  %s1979_s11 = sphi %s2054_s11, %s3161_s11   ;;  %s1975_s10 = sphi %s2052_s10, %s3160_s10   ;;  %s1971_s9 = sphi %s2050_s9, %s3159_s9  }
   0xe   : > { %p54_p0 = scmp.ne.s32.totalorder %s1975_s10, %s1971_s9  ;;  %p55_p1 = scmp.eq.s32.totalorder %s2071_s0, 0 }
   0xf   : > { %p209_p2 = scmp.eq.s32.totalorder %s2071_s0, 1  ;;  %p215_p3 = scmp.eq.s32.totalorder %s1589_s13, 1 }
  0x10   : > { %p2080_p4 = por %p55_p1, %p54_p0  ;;  %p1590_p5 = scmp.ge.s32.totalorder %s1983_s12, 1 }
  0x11   : > { %p2085_p6 = por %p215_p3, %p54_p0  ;;  %p222_p7 = scmp.lt.s32.totalorder %s1983_s12, 3 }
  0x12   : > { %s3145_s2 = sld [smem:[#allocation18_spill]]  ;;  %s1986_s20 = smov [#allocation7]  }
  0x13   : > { %p2093_p8 = pnand %p1590_p5, %p222_p7  ;;  %s235_s21 = sshll.u32 %s1986_s20, 4  ;;  %s236_s21 = int_to_ptr.vmem [resolvable:$true] %s235_s21 }
  0x14   : > { %s253_s25 = sshll.u32 %s3136_s5, 4  ;;  %s1987_s26 = smov 256   ;;  %s254_s25 = int_to_ptr.hbm [resolvable:$true] %s253_s25 }
  0x15   : > { %p1653_p9 = pneg %p2093_p8  ;;  %s1988_s27 = smov 16  }
  0x16   : > { %s1989_s28 = smov [#allocation9]   ;;  %s3140_s30 = smov 512  }
  0x17   : > { %p2101_p10 = pnand %p1653_p9, %p55_p1  ;;  %s255_s29 = sshll.u32 %s1989_s28, 4  ;;  %s256_s29 = int_to_ptr.vmem [resolvable:$true] %s255_s29 }
  0x18   : > { %s233_s18 = sshll.u32 %s3145_s2, 4  ;;  %s3141_s13 = smov 32   ;;  %s234_s18 = int_to_ptr.hbm [resolvable:$true] %s233_s18 }
  0x19   : > { %1656 = dma.hbm_to_vmem [thread:$0]  (!%p2101_p10), %s234_s18, 768, %s236_s21, [#allocation8], %s1987_s26, %s1987_s26, %s1988_s27  }
  0x1a   : > { %1659 = dma.hbm_to_vmem [thread:$0]  (!%p2101_p10), %s254_s25, 9216, %s256_s29, [#allocation8], %s3140_s30, %s3140_s30, %s3141_s13  }
  0x1b   : > { %s267_s18 = sshll.u32 %s3137_s6, 4  ;;  %s1992_s20 = smov [#allocation10]   ;;  %s268_s18 = int_to_ptr.hbm [resolvable:$true] %s267_s18 }
  0x1c   : > { %s269_s21 = sshll.u32 %s1992_s20, 4  ;;  %s2125_s23 = sadd.s32 1, %s1983_s12   ;;  %s270_s21 = int_to_ptr.vmem [resolvable:$true] %s269_s21 }
  0x1d   : > { %1662 = dma.hbm_to_vmem [thread:$0]  (!%p2101_p10), %s268_s18, 4608, %s270_s21, [#allocation11], %s3140_s30, %s3140_s30, %s3141_s13  }
  0x1e   : > { %s38_s24 = ssub.s32 %s1983_s12, %s2125_s23  ;;  %s41_s25 = sadd.s32 1, %s1979_s11 }
  0x1f   : > { %p39_p12 = scmp.eq.s32.totalorder %s38_s24, 0  ;;  %p48_p13 = scmp.ne.s32.totalorder %s1979_s11, %s1975_s10 }
  0x20   : > { %p49_p0 = scmp.eq.s32.totalorder %s1983_s12, 0  ;;  %p1674_p5 = scmp.lt.s32.totalorder %s1983_s12, 2 }
  0x21   : > { %s2134_s26 = scalar_select %p39_p12, %s1979_s11, %s41_s25  }
  0x22   : > { %p2138_p3 = por %p209_p2, %p48_p13  ;;  %s283_s22 = sand.u32 1, %s1979_s11  }
  0x23   : > { %s1635_s28 = sshll.u32 %s1983_s12, 6  ;;  %p50_p7 = por %p49_p0, %p48_p13 }
  0x24   : > { %s1595_s29 = sshll.u32 %s283_s22, 6  ;;  %s292_s18 = scalar_lea.hbm %s3132_s1, %s1635_s28 }
  0x25   : > { %s293_s20 = sshll.u32 %s292_s18, 4  ;;  %s287_s21 = scalar_lea.vmem [#allocation4], %s1595_s29  ;;  %s294_s20 = int_to_ptr.hbm [resolvable:$true] %s293_s20 }
  0x26   : > { %s295_s24 = sshll.u32 %s287_s21, 4  ;;  %p2148_p9 = pnand %p1674_p5, %p50_p7  ;;  %s296_s24 = int_to_ptr.vmem [resolvable:$true] %s295_s24 }
  0x27   : > { %s284_s30 = scalar_lea.sflag [#allocation5], %s283_s22  ;;  %s1877_s13 = sshra.s32 %s294_s20, 4  ;;  %s1878_s13 = int_to_ptr.hbm [resolvable:$true] %s1877_s13 }
  0x28   : > { %s1879_s2 = scalar_lea.hbm %s1878_s13, 64  ;;  %p1881_p10 = pneg %p2148_p9 }
  0x29   : > { %p1880_p2 = scmp.ne.s32.totalorder %s1878_s13, %s1879_s2  ;;  %s1884_s29 = scalar_lea.hbm %s3132_s1, 128 }
  0x2a   : > { %p1885_p0 = scmp.lt.s32.totalorder %s1878_s13, %s3132_s1  ;;  %p1886_p5 = scmp.lt.s32.totalorder %s1884_s29, %s1879_s2 }
  0x2b   : > { %p1882_p12 = pnand %p1881_p10, %p1880_p2 }
  0x2c   : > { %p1887_p7 = por %p1886_p5, %p1885_p0 }
  0x2d   : > { %p1883_p13 = pneg %p1882_p12 }
  0x2f   : > { %p1888_p11 = pnand %p1887_p7, %p1883_p13 }
  0x31   : > { %1891 = shalt.err (!%p1888_p11)
}
  0x32   : > { %s3150_s22 = smov 32   ;;  %s3151_s21 = smov 512  }
  0x33   : > { %1666 = dma.hbm_to_vmem [thread:$0]  (!%p2148_p9), %s294_s20, 1024, %s296_s24, %s284_s30, %s3151_s21, %s3151_s21, %s3150_s22  }
  0x34   : > { %314 = sbr.rel (%p2093_p8) target bundleno = 891 (0x37b), region = 48  ;;  %s2168_s28 = sand.u32 (!%p2093_p8), 1, %s1975_s10  }
  0x35   : > { %s1599_s13 = sshll.u32 (!%p2093_p8), %s2168_s28, 6  ;;  %s317_s2 = scalar_lea.sflag (!%p2093_p8), [#allocation5], %s2168_s28 }
  0x36   : > { %s2172_s16 = scalar_lea.vmem (!%p2093_p8), [#allocation4], %s1599_s13 }
  0x39   : > { %1954 = dma.done.wait (%p2080_p4), %s317_s2, 1024  }
  0x3a   : > { %1956 = vsyncadd (%p2080_p4), %s317_s2, 4294966272 }
  0x3b   : > { %1958 = dma.done.wait (%p55_p1), [#allocation8], 9984  }
  0x3c   : > { %1960 = vsyncadd (%p55_p1), [#allocation8], 4294957312 }
  0x3d   : > { %1962 = dma.done.wait (%p55_p1), [#allocation11], 4608  }
  0x3e   : > { %1964 = vsyncadd (%p55_p1), [#allocation11], 4294962688  ;;  %s1605_s19 = sshll.u32 %s2071_s0, 1  ;;  %s1603_s30 = sshll.u32 %s2168_s28, 5 }
  0x3f   : > { %s376_s14 = sld [smem:[#allocation3 + %s1605_s19]]  ;;  %s377_s20 = sadd.s32 1, %s1605_s19 }
  0x40   : > { %s378_s24 = sld [smem:[#allocation3 + %s377_s20]]  ;;  %p371_p4 = scmp.lt.s32.totalorder %s2071_s0, 1 }
  0x41   : > { %s2195_s13 = scalar_lea.vmem [#allocation12], %s1603_s30 }
  0x42   : > { %s372_s25 = scalar_select %p371_p4, %s2071_s0, 1 }
  0x44   : > { %s1604_s29 = sshll.u32 %s372_s25, 2 }
  0x45   : > { %s2193_s21 = scalar_lea.vmem %s3138_s7, %s1604_s29 }
  0x46   : > { %s379_s17 = sadd.f32 %s378_s24, %s376_s14 }
  0x48   : > { %p380_p8 = scmp.eq.f32.partialorder %s379_s17, 0.0 }
  0x49   : > { %v384_v0 = vld [vmem:[%s2172_s16 + $0x20] sm:$0xff] (%p380_p8)  ;;  %v385_v1 = vld [vmem:[%s2172_s16 + $0x28] sm:$0xff] (%p380_p8)  ;;  %v386_v2 = vld [vmem:[%s2172_s16 + $0x30] sm:$0xff] (%p380_p8) }
  0x4a   : > { %383 = sbr.rel (!%p380_p8) target bundleno = 79 (0x4f), region = 68  ;;  %388 = vst [vmem:[%s2195_s13] sm:$0xff] (%p380_p8), %v384_v0  ;;  %v387_v3 = vld [vmem:[%s2172_s16 + $0x38] sm:$0xff] (%p380_p8) }
  0x4b   : > { %389 = vst [vmem:[%s2195_s13 + $0x8] sm:$0xff] (%p380_p8), %v385_v1 }
  0x4c   : > { %390 = vst [vmem:[%s2195_s13 + $0x10] sm:$0xff] (%p380_p8), %v386_v2 }
  0x4d   : > { %391 = vst [vmem:[%s2195_s13 + $0x18] sm:$0xff] (%p380_p8), %v387_v3 }
  0x4f PF: > { %p392_p1 = scmp.ne.f32.partialorder %s379_s17, 0.0 }
  0x50   : > { %v2206_v4 = vld [vmem:[%s2172_s16 + $0x28] sm:$0xff] (%p392_p1)  ;;  %v2209_v5 = vld [vmem:[%s2172_s16 + $0x20] sm:$0xff] (%p392_p1)  ;;  %s1993_s2 = smov (%p392_p1), 111   ;;  %s1994_s19 = smov (%p392_p1), 112   ;;  %v2221_v7 = vld [vmem:[%s2172_s16 + $0x30] sm:$0xff] (%p392_p1)  ;;  %v492_v12 = vlaneseq (%p392_p1)  ;;  %vm774_vm5 = vcmask (%p392_p1), 130048  }
  0x51   : > { %395 = sbr.rel (!%p392_p1) target bundleno = 876 (0x36c), region = 72  ;;  %v2212_v6 = vld [vmem:[%s2172_s16 + $0x8] sm:$0xff] (%p392_p1)  ;;  %659 = vrot.lane.b32.xlu0 (%p392_p1), %v2206_v4, %s1993_s2  ;;  %630 = vrot.lane.b32.xlu2 (%p392_p1), %v2209_v5, %s1994_s19  ;;  %v2224_v8 = vld [vmem:[%s2172_s16 + $0x10] sm:$0xff] (%p392_p1)  ;;  %s1995_s30 = smov (%p392_p1), 113   ;;  %v473_v23 = vld [vmem:[#allocation9 + $0x228] sm:$0xff] (%p392_p1) }
  0x52   : > { %657 = vrot.lane.b32.xlu1 (%p392_p1), %v2212_v6, %s1993_s2  ;;  %v2233_v9 = vld [vmem:[%s2172_s16] sm:$0xff] (%p392_p1)  ;;  %s1996_s14 = smov (%p392_p1), 127   ;;  %s1997_s20 = smov (%p392_p1), 1   ;;  %v2266_v10 = vld [vmem:[%s2172_s16 + $0x38] sm:$0xff] (%p392_p1)  ;;  %v2303_v14 = vand.u32 (%p392_p1), 127, %v492_v12  ;;  %v464_v15 = vld [vmem:[#allocation9 + $0x1e0] sm:$0xff] (%p392_p1) }
  0x53   : > { %v2275_v11 = vld [vmem:[%s2172_s16 + $0x18] sm:$0xff] (%p392_p1)  ;;  %s1998_s24 = smov (%p392_p1), 15   ;;  %s1999_s25 = smov (%p392_p1), 16   ;;  %v460_v37 = vld [vmem:[#allocation9 + $0x1c0] sm:$0xff] (%p392_p1) }
  0x54   : > { %vm644_vm0 = vcmp.lt.s32.totalorder (%p392_p1), %v2303_v14, 112  ;;  %s2000_s29 = smov (%p392_p1), 17   ;;  %vm669_vm1 = vcmp.lt.s32.totalorder (%p392_p1), %v2303_v14, 111  ;;  %v465_v24 = vld [vmem:[#allocation9 + $0x1e8] sm:$0xff] (%p392_p1)  ;;  %vm619_vm2 = vcmp.lt.s32.totalorder (%p392_p1), %v2303_v14, 113  ;;  %v456_v44 = vld [vmem:[#allocation9 + $0x1a0] sm:$0xff] (%p392_p1) }
  0x55   : > { %v469_v29 = vld [vmem:[#allocation9 + $0x208] sm:$0xff] (%p392_p1)  ;;  %v452_v47 = vld [vmem:[#allocation9 + $0x180] sm:$0xff] (%p392_p1)  ;;  %vm594_vm3 = vcmp.lt.s32.totalorder (%p392_p1), %v2303_v14, 127  ;;  %vm569_vm4 = vcmp.lt.s32.totalorder (%p392_p1), %v2303_v14, 1  ;;  %vm544_vm6 = vcmp.lt.s32.totalorder (%p392_p1), %v2303_v14, 15  ;;  %vm519_vm7 = vcmp.lt.s32.totalorder (%p392_p1), %v2303_v14, 16 }
  0x56   : > { %v461_v38 = vld [vmem:[#allocation9 + $0x1c8] sm:$0xff]  ;;  %v448_v55 = vld [vmem:[#allocation9 + $0x160] sm:$0xff]  ;;  %vm494_vm8 = vcmp.lt.s32.totalorder %v2303_v14, 17 }
  0x57   : > { %v444_v62 = vld [vmem:[#allocation9 + $0x140] sm:$0xff] }
  0x58   : > { %v440_v0 = vld [vmem:[#allocation9 + $0x120] sm:$0xff] }
  0x59   : > { %663 = vrot.lane.b32.xlu0 %v2221_v7, %s1993_s2  ;;  %634 = vrot.lane.b32.xlu2 %v2206_v4, %s1994_s19  ;;  %v436_v3 = vld [vmem:[#allocation9 + $0x100] sm:$0xff]  ;;  %v714_v12 = vmul.f32 %v440_v0, %v2209_v5 }
  0x5a   : > { %661 = vrot.lane.b32.xlu1 %v2224_v8, %s1993_s2 }
  0x61   : > { %605 = vrot.lane.b32.xlu2 %v2209_v5, %s1995_s30  ;;  %628 = vrot.lane.b32.xlu0 %v2233_v9, %s1994_s19 }
  0x62   : > { %632 = vrot.lane.b32.xlu1 %v2212_v6, %s1994_s19 }
  0x69   : > { %607 = vrot.lane.b32.xlu2 %v2212_v6, %s1995_s30  ;;  %609 = vrot.lane.b32.xlu0 %v2206_v4, %s1995_s30 }
  0x6a   : > { %603 = vrot.lane.b32.xlu1 %v2233_v9, %s1995_s30 }
  0x71   : > { %638 = vrot.lane.b32.xlu2 %v2221_v7, %s1994_s19  ;;  %580 = vrot.lane.b32.xlu0 %v2209_v5, %s1996_s14 }
  0x72   : > { %584 = vrot.lane.b32.xlu1 %v2206_v4, %s1996_s14 }
  0x79   : > { %636 = vrot.lane.b32.xlu2 %v2224_v8, %s1994_s19  ;;  %578 = vrot.lane.b32.xlu0 %v2233_v9, %s1996_s14 }
  0x7a   : > { %582 = vrot.lane.b32.xlu1 %v2212_v6, %s1996_s14 }
  0x81   : > { %555 = vrot.lane.b32.xlu2 %v2209_v5, %s1997_s20  ;;  %613 = vrot.lane.b32.xlu0 %v2221_v7, %s1995_s30 }
  0x82   : > { %611 = vrot.lane.b32.xlu1 %v2224_v8, %s1995_s30 }
  0x89   : > { %642 = vrot.lane.b32.xlu2 %v2266_v10, %s1994_s19  ;;  %567 = vrot.lane.b32.xlu0 %v2266_v10, %s1997_s20 }
  0x8a   : > { %588 = vrot.lane.b32.xlu1 %v2221_v7, %s1996_s14 }
  0x91   : > { %586 = vrot.lane.b32.xlu2 %v2224_v8, %s1996_s14  ;;  %553 = vrot.lane.b32.xlu0 %v2233_v9, %s1997_s20 }
  0x92   : > { %565 = vrot.lane.b32.xlu1 %v2275_v11, %s1997_s20 }
  0x99   : > { %542 = vrot.lane.b32.xlu2 %v2266_v10, %s1998_s24  ;;  %640 = vrot.lane.b32.xlu0 %v2275_v11, %s1994_s19 }
  0x9a   : > { %530 = vrot.lane.b32.xlu1 %v2209_v5, %s1998_s24 }
  0xa1   : > { %528 = vrot.lane.b32.xlu2 %v2233_v9, %s1998_s24  ;;  %617 = vrot.lane.b32.xlu0 %v2266_v10, %s1995_s30 }
  0xa2   : > { %667 = vrot.lane.b32.xlu1 %v2266_v10, %s1993_s2 }
  0xa9   : > { %665 = vrot.lane.b32.xlu2 %v2275_v11, %s1993_s2  ;;  %540 = vrot.lane.b32.xlu0 %v2275_v11, %s1998_s24 }
  0xaa   : > { %615 = vrot.lane.b32.xlu1 %v2275_v11, %s1995_s30 }
  0xab   : > { %v2301_v13 = vpop.permute.xlu2 %630 }
  0xb1   : > { %559 = vrot.lane.b32.xlu2 %v2206_v4, %s1997_s20  ;;  %505 = vrot.lane.b32.xlu0 %v2209_v5, %s1999_s25 }
  0xb2   : > { %517 = vrot.lane.b32.xlu1 %v2266_v10, %s1999_s25 }
  0xb3   : > { %v635_v16 = vpop.permute.xlu2 %634 }
  0xb4   : > { %v650_v17 = vsel %vm644_vm0, %v2301_v13, %v635_v16 }
  0xb5   : > { %v738_v18 = vmul.f32 %v650_v17, %v464_v15  ;;  %v710_v15 = vmul.f32 %v436_v3, %v2233_v9 }
  0xb7   : > { %784 = vmatpush.msra.mxu0 %v738_v18 }
  0xb9   : > { %503 = vrot.lane.b32.xlu2 %v2233_v9, %s1999_s25  ;;  %592 = vrot.lane.b32.xlu0 %v2266_v10, %s1996_s14 }
  0xba   : > { %655 = vrot.lane.b32.xlu1 %v2209_v5, %s1993_s2 }
  0xbb   : > { %v2321_v19 = vpop.permute.xlu2 %605 }
  0xc1   : > { %590 = vrot.lane.b32.xlu2 %v2275_v11, %s1996_s14  ;;  %515 = vrot.lane.b32.xlu0 %v2275_v11, %s1999_s25 }
  0xc2   : > { %557 = vrot.lane.b32.xlu1 %v2212_v6, %s1997_s20 }
  0xc3   : > { %v2329_v20 = vpop.permute.xlu0 %659  ;;  %v2331_v21 = vpop.permute.xlu2 %607 }
  0xc4   : > { %v2333_v22 = vpop.permute.xlu1 %657 }
  0xc9   : > { %490 = vrot.lane.b32.xlu2 %v2266_v10, %s2000_s29  ;;  %653 = vrot.lane.b32.xlu0 %v2233_v9, %s1993_s2 }
  0xca   : > { %478 = vrot.lane.b32.xlu1 %v2209_v5, %s2000_s29 }
  0xcb   : > { %v2342_v25 = vpop.permute.xlu0 %663  ;;  %v639_v26 = vpop.permute.xlu2 %638 }
  0xcc   : > { %v2344_v27 = vpop.permute.xlu1 %661  ;;  %v673_v28 = vsel %vm669_vm1, %v2329_v20, %v2342_v25  ;;  %v648_v30 = vsel %vm644_vm0, %v635_v16, %v639_v26  ;;  %v457_v16 = vld [vmem:[#allocation9 + $0x1a8] sm:$0xff] }
  0xcd   : > { %v672_v31 = vsel %vm669_vm1, %v2333_v22, %v2344_v27  ;;  %v747_v32 = vmul.f32 %v673_v28, %v473_v23  ;;  %v739_v33 = vmul.f32 %v648_v30, %v465_v24  ;;  %v432_v30 = vld [vmem:[#allocation9 + $0xe0] sm:$0xff] }
  0xce   : > { %v743_v34 = vmul.f32 %v672_v31, %v469_v29  ;;  %v2446_v31 = vld [vmem:[#allocation7 + $0x8] sm:$0xff] }
  0xcf   : > { %876 = vmatpush.msra.mxu3 %v747_v32  ;;  %836 = vmatpush.msra.mxu2 %v739_v33 }
  0xd1   : > { %877 = vmatpush.msra.mxu3 %v743_v34  ;;  %488 = vrot.lane.b32.xlu2 %v2275_v11, %s2000_s29  ;;  %v449_v34 = vld [vmem:[#allocation9 + $0x168] sm:$0xff] }
  0xd2   : > { %476 = vrot.lane.b32.xlu1 %v2233_v9, %s2000_s29  ;;  %534 = vrot.lane.b32.xlu0 %v2206_v4, %s1998_s24 }
  0xd3   : > { %v2362_v35 = vpop.permute.xlu2 %636  ;;  %v2364_v36 = vpop.permute.xlu0 %628  ;;  %1609 = vmatmul.msk.f32.vlgmr.msra.gmra.mxu3 %vm774_vm5, %v2446_v31 }
  0xd4   : > { %v633_v39 = vpop.permute.xlu1 %632 }
  0xd5   : > { %v647_v40 = vsel %vm644_vm0, %v633_v39, %v2362_v35  ;;  %v649_v41 = vsel %vm644_vm0, %v2364_v36, %v633_v39 }
  0xd6   : > { %v734_v42 = vmul.f32 %v649_v41, %v460_v37  ;;  %v735_v43 = vmul.f32 %v647_v40, %v461_v38  ;;  %v445_v41 = vld [vmem:[#allocation9 + $0x148] sm:$0xff] }
  0xd8   : > { %785 = vmatpush.msra.mxu0 %v734_v42  ;;  %837 = vmatpush.msra.mxu2 %v735_v43  ;;  %v441_v42 = vld [vmem:[#allocation9 + $0x128] sm:$0xff] }
  0xd9   : > { %563 = vrot.lane.b32.xlu2 %v2221_v7, %s1997_s20 }
  0xda   : > { %509 = vrot.lane.b32.xlu1 %v2206_v4, %s1999_s25  ;;  %532 = vrot.lane.b32.xlu0 %v2212_v6, %s1998_s24 }
  0xdb   : > { %v2379_v45 = vpop.permute.xlu2 %555  ;;  %v610_v46 = vpop.permute.xlu0 %609 }
  0xdc   : > { %v2381_v48 = vpop.permute.xlu1 %603  ;;  %v625_v49 = vsel %vm619_vm2, %v2321_v19, %v610_v46 }
  0xdd   : > { %v624_v50 = vsel %vm619_vm2, %v2381_v48, %v2331_v21  ;;  %v730_v51 = vmul.f32 %v625_v49, %v456_v44  ;;  %v437_v44 = vld [vmem:[#allocation9 + $0x108] sm:$0xff] }
  0xde   : > { %v726_v52 = vmul.f32 %v624_v50, %v452_v47  ;;  %v715_v47 = vmul.f32 %v441_v42, %v2206_v4  ;;  %v711_v49 = vmul.f32 %v437_v44, %v2212_v6 }
  0xdf   : > { %786 = vmatpush.msra.mxu0 %v730_v51 }
  0xe1   : > { %482 = vrot.lane.b32.xlu2 %v2206_v4, %s2000_s29  ;;  %787 = vmatpush.msra.mxu0 %v726_v52  ;;  %v428_v52 = vld [vmem:[#allocation9 + $0xc0] sm:$0xff]  ;;  %v433_v4 = vld [vmem:[#allocation9 + $0xe8] sm:$0xff] }
  0xe2   : > { %561 = vrot.lane.b32.xlu1 %v2224_v8, %s1997_s20  ;;  %507 = vrot.lane.b32.xlu0 %v2212_v6, %s1999_s25 }
  0xe3   : > { %v2397_v53 = vpop.permute.xlu2 %642  ;;  %v2399_v54 = vpop.permute.xlu0 %580 }
  0xe4   : > { %v2404_v56 = vsel %vm644_vm0, %v639_v26, %v2397_v53  ;;  %v585_v57 = vpop.permute.xlu1 %584  ;;  %v453_v26 = vld [vmem:[#allocation9 + $0x188] sm:$0xff] }
  0xe5   : > { %v600_v58 = vsel %vm594_vm3, %v2399_v54, %v585_v57 }
  0xe6   : > { %v722_v59 = vmul.f32 %v600_v58, %v448_v55 }
  0xe8   : > { %788 = vmatpush.msra.mxu0 %v722_v59 }
  0xe9   : > { %536 = vrot.lane.b32.xlu2 %v2224_v8, %s1998_s24 }
  0xea   : > { %480 = vrot.lane.b32.xlu1 %v2212_v6, %s2000_s29  ;;  %538 = vrot.lane.b32.xlu0 %v2221_v7, %s1998_s24 }
  0xeb   : > { %v2415_v60 = vpop.permute.xlu2 %586  ;;  %v2417_v61 = vpop.permute.xlu0 %578 }
  0xec   : > { %v583_v63 = vpop.permute.xlu1 %582 }
  0xed   : > { %v599_v1 = vsel %vm594_vm3, %v2417_v61, %v583_v63  ;;  %v597_v38 = vsel %vm594_vm3, %v583_v63, %v2415_v60 }
  0xee   : > { %v718_v2 = vmul.f32 %v599_v1, %v444_v62  ;;  %v424_v62 = vld [vmem:[#allocation9 + $0xa0] sm:$0xff] }
  0xf0   : > { %789 = vmatpush.msra.mxu0 %v718_v2 }
  0xf1   : > { %486 = vrot.lane.b32.xlu2 %v2221_v7, %s2000_s29 }
  0xf2   : > { %511 = vrot.lane.b32.xlu1 %v2224_v8, %s1999_s25  ;;  %513 = vrot.lane.b32.xlu0 %v2221_v7, %s1999_s25 }
  0xf3   : > { %v2430_v17 = vpop.permute.xlu2 %542  ;;  %v2432_v18 = vpop.permute.xlu0 %613  ;;  %790 = vmatpush.msra.mxu0 %v714_v12 }
  0xf4   : > { %v2434_v23 = vpop.permute.xlu1 %611  ;;  %v623_v24 = vsel %vm619_vm2, %v610_v46, %v2432_v18  ;;  %v719_v46 = vmul.f32 %v597_v38, %v445_v41 }
  0xf5   : > { %v622_v9 = vsel %vm619_vm2, %v2331_v21, %v2434_v23  ;;  %v731_v28 = vmul.f32 %v623_v24, %v457_v16  ;;  %791 = vmatpush.msra.mxu0 %v710_v15  ;;  %v474_v16 = vld [vmem:[#allocation9 + $0x230] sm:$0xff] }
  0xf6   : > { %v727_v29 = vmul.f32 %v622_v9, %v453_v26  ;;  %v470_v9 = vld [vmem:[#allocation9 + $0x210] sm:$0xff] }
  0xf7   : > { %838 = vmatpush.msra.mxu2 %v731_v28  ;;  %v467_v28 = vld [vmem:[#allocation9 + $0x1f8] sm:$0xff] }
  0xf9   : > { %839 = vmatpush.msra.mxu2 %v727_v29  ;;  %v652_v29 = vsel %vm644_vm0, %v2397_v53, %v2301_v13  ;;  %v455_v53 = vld [vmem:[#allocation9 + $0x198] sm:$0xff] }
  0xfa   : > { %484 = vrot.lane.b32.xlu0 %v2224_v8, %s2000_s29  ;;  %v741_v38 = vmul.f32 %v652_v29, %v467_v28  ;;  %v443_v28 = vld [vmem:[#allocation9 + $0x138] sm:$0xff] }
  0xfb   : > { %v2448_v32 = vpop.permute.xlu2 %528  ;;  %v2450_v33 = vpop.permute.xlu0 %567 }
  0xfc   : > { %v2454_v21 = vpop.permute.xlu1 %588  ;;  %v577_v37 = vsel %vm569_vm4, %v2450_v33, %v2379_v45 }
  0xfd   : > { %v598_v39 = vsel %vm594_vm3, %v585_v57, %v2454_v21  ;;  %v706_v40 = vmul.f32 %v577_v37, %v432_v30 }
  0xfe   : > { %v723_v43 = vmul.f32 %v598_v39, %v449_v34  ;;  %v463_v34 = vld [vmem:[#allocation9 + $0x1d8] sm:$0xff] }
  0xff   : > { %792 = vmatpush.msra.mxu0 %v706_v40  ;;  %v459_v39 = vld [vmem:[#allocation9 + $0x1b8] sm:$0xff]  ;;  %v420_v40 = vld [vmem:[#allocation9 + $0x80] sm:$0xff] }
 0x100   : > { %840 = vmatpush.msra.mxu2 %v723_v43 }
 0x102   : > { %841 = vmatpush.msra.mxu2 %v719_v46 }
 0x103   : > { %v2468_v50 = vpop.permute.xlu2 %665  ;;  %v2470_v51 = vpop.permute.xlu0 %553 }
 0x104   : > { %v2472_v55 = vpop.permute.xlu1 %565  ;;  %842 = vmatpush.msra.mxu2 %v715_v47 }
 0x105   : > { %v576_v57 = vsel %vm569_vm4, %v2472_v55, %v2470_v51 }
 0x106   : > { %v702_v58 = vmul.f32 %v576_v57, %v428_v52  ;;  %843 = vmatpush.msra.mxu2 %v711_v49  ;;  %v416_v57 = vld [vmem:[#allocation9 + $0x60] sm:$0xff] }
 0x108   : > { %793 = vmatpush.msra.mxu0 %v702_v58 }
 0x10b   : > { %v2479_v6 = vpop.permute.xlu2 %559  ;;  %v2481_v59 = vpop.permute.xlu0 %640 }
 0x10c   : > { %v575_v63 = vsel %vm569_vm4, %v2379_v45, %v2479_v6  ;;  %v2487_v0 = vpop.permute.xlu1 %530  ;;  %v670_v45 = vsel %vm669_vm1, %v2344_v27, %v2468_v50  ;;  %v651_v37 = vsel %vm644_vm0, %v2481_v59, %v2364_v36 }
 0x10d   : > { %v552_v1 = vsel %vm544_vm6, %v2430_v17, %v2487_v0  ;;  %v707_v2 = vmul.f32 %v575_v63, %v433_v4  ;;  %v744_v27 = vmul.f32 %v670_v45, %v470_v9  ;;  %v737_v41 = vmul.f32 %v651_v37, %v463_v34  ;;  %v451_v63 = vld [vmem:[#allocation9 + $0x178] sm:$0xff] }
 0x10e   : > { %v698_v3 = vmul.f32 %v552_v1, %v424_v62  ;;  %v2544_v62 = vld [vmem:[#allocation7 + $0x18] sm:$0xff]  ;;  %v439_v37 = vld [vmem:[#allocation9 + $0x118] sm:$0xff] }
 0x10f   : > { %844 = vmatpush.msra.mxu2 %v707_v2  ;;  %1610 = vmatmul.msk.f32.gmra.mxu3 %vm774_vm5, %v2544_v62 }
 0x110   : > { %794 = vmatpush.msra.mxu0 %v698_v3  ;;  %v472_v3 = vld [vmem:[#allocation9 + $0x220] sm:$0xff] }
 0x113   : > { %v2493_v12 = vpop.permute.xlu2 %503  ;;  %v2495_v15 = vpop.permute.xlu0 %617 }
 0x114   : > { %v2497_v24 = vpop.permute.xlu1 %667 }
 0x115   : > { %v671_v26 = vsel %vm669_vm1, %v2342_v25, %v2497_v24  ;;  %v627_v25 = vsel %vm619_vm2, %v2495_v15, %v2321_v19 }
 0x116   : > { %v748_v30 = vmul.f32 %v671_v26, %v474_v16  ;;  %v733_v44 = vmul.f32 %v627_v25, %v459_v39  ;;  %v447_v16 = vld [vmem:[#allocation9 + $0x158] sm:$0xff]  ;;  %v713_v39 = vmul.f32 %v439_v37, %v2275_v11  ;;  %v412_v25 = vld [vmem:[#allocation9 + $0x40] sm:$0xff] }
 0x118   : > { %928 = vmatpush.msrb.mxu3 %v748_v30 }
 0x11a   : > { %929 = vmatpush.msrb.mxu3 %v744_v27 }
 0x11b   : > { %v2519_v13 = vpop.permute.xlu2 %590  ;;  %v2521_v42 = vpop.permute.xlu0 %540 }
 0x11c   : > { %940 = vmatpush.msra.mxu3 %v741_v38  ;;  %v2523_v43 = vpop.permute.xlu1 %615  ;;  %v551_v36 = vsel %vm544_vm6, %v2521_v42, %v2448_v32  ;;  %v601_v45 = vsel %vm594_vm3, %v2519_v13, %v2417_v61  ;;  %v717_v61 = vmul.f32 %v443_v28, %v2266_v10  ;;  %v2567_v38 = vld [vmem:[#allocation7 + $0x28] sm:$0xff]  ;;  %v429_v10 = vld [vmem:[#allocation9 + $0xc8] sm:$0xff]  ;;  %v462_v28 = vld [vmem:[#allocation9 + $0x1d0] sm:$0xff] }
 0x11d   : > { %v626_v19 = vsel %vm619_vm2, %v2523_v43, %v2381_v48  ;;  %v694_v46 = vmul.f32 %v551_v36, %v420_v40  ;;  %v721_v27 = vmul.f32 %v601_v45, %v447_v16  ;;  %1611 = vmatmul.msk.f32.gmra.mxu3 %vm774_vm5, %v2567_v38  ;;  %v645_v16 = vsel %vm644_vm0, %v2362_v35, %v2481_v59  ;;  %v454_v59 = vld [vmem:[#allocation9 + $0x190] sm:$0xff] }
 0x11e   : > { %941 = vmatpush.msra.mxu3 %v737_v41  ;;  %v729_v47 = vmul.f32 %v626_v19, %v455_v53  ;;  %v2001_v53 = vmov 0   ;;  %v736_v37 = vmul.f32 %v645_v16, %v462_v28  ;;  %v620_v35 = vsel %vm619_vm2, %v2434_v23, %v2523_v43  ;;  %v450_v43 = vld [vmem:[#allocation9 + $0x170] sm:$0xff]  ;;  %v417_v16 = vld [vmem:[#allocation9 + $0x68] sm:$0xff] }
 0x11f   : > { %795 = vmatpush.msra.mxu0 %v694_v46  ;;  %1728 = vset.pattern.permute.xlu1 %v2001_v53  ;;  %v728_v23 = vmul.f32 %v620_v35, %v454_v59 }
 0x120   : > { %942 = vmatpush.msra.mxu3 %v733_v44  ;;  %1729 = vset.pattern.permute.xlu2 %v2001_v53 }
 0x121   : > { %1730 = vset.pattern.permute.xlu0 %v2001_v53 }
 0x122   : > { %943 = vmatpush.msra.mxu3 %v729_v47 }
 0x123   : > { %v2534_v49 = vpop.permute.xlu2 %490  ;;  %v2536_v52 = vpop.permute.xlu0 %505 }
 0x124   : > { %v2538_v58 = vpop.permute.xlu1 %517 }
 0x125   : > { %v527_v48 = vsel %vm519_vm7, %v2538_v58, %v2536_v52  ;;  %1612 = vmatmul.msk.f32.vlgmr.msrb.gmra.mxu3 %vm774_vm5, %v2446_v31 }
 0x126   : > { %v690_v4 = vmul.f32 %v527_v48, %v416_v57 }
 0x128   : > { %796 = vmatpush.msra.mxu0 %v690_v4  ;;  %v466_v4 = vld [vmem:[#allocation9 + $0x1f0] sm:$0xff] }
 0x12b   : > { %v2548_v1 = vpop.permute.xlu2 %488  ;;  %v2550_v2 = vpop.permute.xlu0 %592 }
 0x12c   : > { %v2556_v26 = vpop.permute.xlu1 %655  ;;  %v602_v9 = vsel %vm594_vm3, %v2550_v2, %v2399_v54  ;;  %v435_v54 = vld [vmem:[#allocation9 + $0xf8] sm:$0xff] }
 0x12d   : > { %v725_v29 = vmul.f32 %v602_v9, %v451_v63  ;;  %v675_v30 = vsel %vm669_vm1, %v2556_v26, %v2329_v20  ;;  %v756_v20 = vld [vmem:[%s3135_s4] sm:$0xff]  ;;  %v408_v63 = vld [vmem:[#allocation9 + $0x20] sm:$0xff]  ;;  %1613 = vmatmul.msk.f32.gmra.mxu3 %vm774_vm5, %v2544_v62 }
 0x12e   : > { %v746_v34 = vmul.f32 %v675_v30, %v472_v3  ;;  %761 = vperm.xlu1 %1728, %v756_v20   ;;  %v595_v20 = vsel %vm594_vm3, %v2415_v60, %v2519_v13 }
 0x12f   : > { %944 = vmatpush.msra.mxu3 %v725_v29  ;;  %v740_v29 = vmul.f32 %v2404_v56, %v466_v4 }
 0x130   : > { %824 = vmatpush.msra.mxu1 %v746_v34  ;;  %v458_v34 = vld [vmem:[#allocation9 + $0x1b0] sm:$0xff] }
 0x131   : > { %945 = vmatpush.msra.mxu3 %v721_v27  ;;  %v596_v27 = vsel %vm594_vm3, %v2454_v21, %v2550_v2  ;;  %v475_v2 = vld [vmem:[#allocation9 + $0x238] sm:$0xff] }
 0x133   : > { %v2575_v40 = vpop.permute.xlu2 %563  ;;  %946 = vmatpush.msra.mxu3 %v717_v61  ;;  %v2577_v41 = vpop.permute.xlu0 %515 }
 0x134   : > { %v571_v11 = vsel %vm569_vm4, %v2575_v40, %v2450_v33  ;;  %v2583_v36 = vpop.permute.xlu1 %557  ;;  %v526_v44 = vsel %vm519_vm7, %v2577_v41, %v2493_v12  ;;  %v468_v33 = vld [vmem:[#allocation9 + $0x200] sm:$0xff] }
 0x135   : > { %v709_v19 = vmul.f32 %v571_v11, %v435_v54  ;;  %v574_v46 = vsel %vm569_vm4, %v2470_v51, %v2583_v36  ;;  %947 = vmatpush.msra.mxu3 %v713_v39  ;;  %v686_v47 = vmul.f32 %v526_v44, %v412_v25  ;;  %v677_v54 = vsel %vm669_vm1, %v2497_v24, %v2556_v26  ;;  %v2646_v24 = vld [vmem:[#allocation7] sm:$0xff] }
 0x136   : > { %v703_v57 = vmul.f32 %v574_v46, %v429_v10  ;;  %v446_v26 = vld [vmem:[#allocation9 + $0x150] sm:$0xff]  ;;  %v471_v46 = vld [vmem:[#allocation9 + $0x218] sm:$0xff]  ;;  %1614 = vmatmul.msk.f32.gmra.mxu3 %vm774_vm5, %v2567_v38 }
 0x137   : > { %797 = vmatpush.msra.mxu0 %v686_v47  ;;  %948 = vmatpush.msra.mxu3 %v709_v19  ;;  %v442_v11 = vld [vmem:[#allocation9 + $0x130] sm:$0xff]  ;;  %v724_v19 = vmul.f32 %v596_v27, %v450_v43  ;;  %v720_v60 = vmul.f32 %v595_v20, %v446_v26  ;;  %v423_v26 = vld [vmem:[#allocation9 + $0x98] sm:$0xff] }
 0x138   : > { %845 = vmatpush.msra.mxu2 %v703_v57  ;;  %v438_v47 = vld [vmem:[#allocation9 + $0x110] sm:$0xff]  ;;  %v716_v13 = vmul.f32 %v442_v11, %v2221_v7 }
 0x13b   : > { %v654_v48 = vpop.permute.xlu0 %653 }
 0x13c   : > { %v2596_v3 = vpop.permute.xlu1 %478  ;;  %v674_v51 = vsel %vm669_vm1, %v654_v48, %v2333_v22  ;;  %v621_v22 = vsel %vm619_vm2, %v2432_v18, %v2495_v15  ;;  %v404_v18 = vld [vmem:[#allocation9] sm:$0xff]  ;;  %v425_v15 = vld [vmem:[#allocation9 + $0xa8] sm:$0xff]  ;;  %v676_v44 = vsel %vm669_vm1, %v2468_v50, %v654_v48  ;;  %v712_v50 = vmul.f32 %v438_v47, %v2224_v8  ;;  %v418_v47 = vld [vmem:[#allocation9 + $0x70] sm:$0xff] }
 0x13d   : > { %v502_v45 = vsel %vm494_vm8, %v2534_v49, %v2596_v3  ;;  %v742_v9 = vmul.f32 %v674_v51, %v468_v33  ;;  %v732_v56 = vmul.f32 %v621_v22, %v458_v34  ;;  %v745_v57 = vmul.f32 %v676_v44, %v471_v46  ;;  %v421_v33 = vld [vmem:[#allocation9 + $0x88] sm:$0xff] }
 0x13e   : > { %v682_v30 = vmul.f32 %v502_v45, %v408_v63  ;;  %v573_v48 = vsel %vm569_vm4, %v2479_v6, %v2575_v40  ;;  %v434_v63 = vld [vmem:[#allocation9 + $0xf0] sm:$0xff]  ;;  %v2673_v6 = vpop.permute.xlu2 %482 }
 0x13f   : > { %825 = vmatpush.msra.mxu1 %v742_v9  ;;  %v2671_v9 = vld [vmem:[#allocation7 + $0x10] sm:$0xff]  ;;  %v708_v40 = vmul.f32 %v573_v48, %v434_v63  ;;  %v500_v34 = vsel %vm494_vm8, %v2596_v3, %v2673_v6  ;;  %v414_v48 = vld [vmem:[#allocation9 + $0x50] sm:$0xff] }
 0x140   : > { %798 = vmatpush.msra.mxu0 %v682_v30  ;;  %1606 = vmatmul.msk.f32.vlgmr.msra.gmra.mxu1 %vm774_vm5, %v2446_v31 }
 0x141   : > { %888 = vmatpush.msrb.mxu1 %v740_v29  ;;  %v430_v29 = vld [vmem:[#allocation9 + $0xd0] sm:$0xff] }
 0x143   : > { %889 = vmatpush.msrb.mxu1 %v736_v37 }
 0x144   : > { %v2626_v61 = vpop.permute.xlu1 %476  ;;  %v2628_v39 = vpop.permute.xlu0 %534 }
 0x145   : > { %890 = vmatpush.msrb.mxu1 %v732_v56  ;;  %v501_v25 = vsel %vm494_vm8, %v2548_v1, %v2626_v61  ;;  %v550_v21 = vsel %vm544_vm6, %v2487_v0, %v2628_v39  ;;  %v749_v0 = vmul.f32 %v677_v54, %v475_v2  ;;  %v409_v56 = vld [vmem:[#allocation9 + $0x28] sm:$0xff]  ;;  %v426_v54 = vld [vmem:[#allocation9 + $0xb0] sm:$0xff] }
 0x146   : > { %v678_v10 = vmul.f32 %v501_v25, %v404_v18  ;;  %v699_v53 = vmul.f32 %v550_v21, %v425_v15  ;;  %v683_v3 = vmul.f32 %v500_v34, %v409_v56  ;;  %v537_v43 = vpop.permute.xlu2 %536 }
 0x147   : > { %891 = vmatpush.msrb.mxu1 %v728_v23  ;;  %v2691_v23 = vld [vmem:[#allocation7 + $0x20] sm:$0xff]  ;;  %v545_v11 = vsel %vm544_vm6, %v537_v43, %v2521_v42 }
 0x148   : > { %799 = vmatpush.msra.mxu0 %v678_v10  ;;  %846 = vmatpush.msra.mxu2 %v699_v53  ;;  %v422_v53 = vld [vmem:[#allocation9 + $0x90] sm:$0xff] }
 0x149   : > { %800 = vmatmul.f32.vlgmr.msra.gmra.mxu0 %v2646_v24  ;;  %892 = vmatpush.msrb.mxu1 %v724_v19 }
 0x14a   : > { %980 = vmatpush.msrb.mxu0 %v749_v0  ;;  %1607 = vmatmul.msk.f32.gmra.mxu1 %vm774_vm5, %v2544_v62  ;;  %v697_v0 = vmul.f32 %v545_v11, %v423_v26 }
 0x14b   : > { %893 = vmatpush.msrb.mxu1 %v720_v60 }
 0x14c   : > { %981 = vmatpush.msrb.mxu0 %v745_v57  ;;  %v2662_v4 = vpop.permute.xlu1 %509  ;;  %v533_v7 = vpop.permute.xlu0 %532 }
 0x14d   : > { %v525_v51 = vsel %vm519_vm7, %v2536_v52, %v2662_v4  ;;  %v549_v8 = vsel %vm544_vm6, %v2448_v32, %v533_v7  ;;  %894 = vmatpush.msrb.mxu1 %v716_v13  ;;  %v431_v52 = vld [vmem:[#allocation9 + $0xd8] sm:$0xff]  ;;  %v413_v32 = vld [vmem:[#allocation9 + $0x48] sm:$0xff] }
 0x14e   : > { %v695_v45 = vmul.f32 %v549_v8, %v421_v33  ;;  %v691_v28 = vmul.f32 %v525_v51, %v417_v16  ;;  %v415_v13 = vld [vmem:[#allocation9 + $0x58] sm:$0xff]  ;;  %v410_v16 = vld [vmem:[#allocation9 + $0x30] sm:$0xff] }
 0x14f   : > { %895 = vmatpush.msrb.mxu1 %v712_v50  ;;  %v411_v51 = vld [vmem:[#allocation9 + $0x38] sm:$0xff] }
 0x150   : > { %847 = vmatpush.msra.mxu2 %v695_v45 }
 0x151   : > { %896 = vmatpush.msrb.mxu1 %v708_v40  ;;  %803 = vmatmul.f32.gmra.mxu0 %v2671_v9 }
 0x152   : > { %848 = vmatpush.msra.mxu2 %v691_v28  ;;  %1608 = vmatmul.msk.f32.gmra.mxu1 %vm774_vm5, %v2567_v38  ;;  %v407_v28 = vld [vmem:[#allocation9 + $0x18] sm:$0xff] }
 0x154   : > { %v562_v30 = vpop.permute.xlu1 %561  ;;  %v508_v22 = vpop.permute.xlu0 %507 }
 0x155   : > { %v570_v37 = vsel %vm569_vm4, %v562_v30, %v2472_v55  ;;  %v572_v35 = vsel %vm569_vm4, %v2583_v36, %v562_v30  ;;  %v524_v59 = vsel %vm519_vm7, %v2493_v12, %v508_v22  ;;  %v427_v55 = vld [vmem:[#allocation9 + $0xb8] sm:$0xff]  ;;  %v405_v36 = vld [vmem:[#allocation9 + $0x8] sm:$0xff]  ;;  %v547_v12 = vsel %vm544_vm6, %v533_v7, %v537_v43 }
 0x156   : > { %v705_v18 = vmul.f32 %v570_v37, %v431_v52  ;;  %v687_v15 = vmul.f32 %v524_v59, %v413_v32  ;;  %v704_v27 = vmul.f32 %v572_v35, %v430_v29  ;;  %v406_v52 = vld [vmem:[#allocation9 + $0x10] sm:$0xff] }
 0x158   : > { %849 = vmatpush.msra.mxu2 %v687_v15  ;;  %897 = vmatpush.msrb.mxu1 %v704_v27 }
 0x159   : > { %949 = vmatpush.msra.mxu3 %v705_v18  ;;  %806 = vmatmul.f32.gmra.mxu0 %v2691_v23 }
 0x15a   : > { %850 = vmatpush.msra.mxu2 %v683_v3 }
 0x15c   : > { %v481_v25 = vpop.permute.xlu1 %480  ;;  %v539_v21 = vpop.permute.xlu0 %538 }
 0x15d   : > { %v499_v2 = vsel %vm494_vm8, %v2626_v61, %v481_v25  ;;  %v546_v20 = vsel %vm544_vm6, %v539_v21, %v2430_v17  ;;  %v548_v10 = vsel %vm544_vm6, %v2628_v39, %v539_v21  ;;  %v696_v61 = vmul.f32 %v547_v12, %v422_v53  ;;  %v487_v17 = vpop.permute.xlu2 %486  ;;  %v419_v39 = vld [vmem:[#allocation9 + $0x78] sm:$0xff] }
 0x15e   : > { %v701_v44 = vmul.f32 %v546_v20, %v427_v55  ;;  %v679_v19 = vmul.f32 %v499_v2, %v405_v36  ;;  %v700_v46 = vmul.f32 %v548_v10, %v426_v54  ;;  %v496_v8 = vsel %vm494_vm8, %v487_v17, %v2534_v49 }
 0x160   : > { %851 = vmatpush.msra.mxu2 %v679_v19  ;;  %898 = vmatpush.msrb.mxu1 %v700_v46 }
 0x161   : > { %950 = vmatpush.msra.mxu3 %v701_v44  ;;  %852 = vmatmul.f32.vlgmr.msra.gmra.mxu2 %v2646_v24 }
 0x162   : > { %899 = vmatpush.msrb.mxu1 %v696_v61  ;;  %1615 = vmatmul.msk.f32.vlgmr.msrb.gmra.mxu0 %vm774_vm5, %v2446_v31 }
 0x163   : > { %951 = vmatpush.msra.mxu3 %v697_v0 }
 0x164   : > { %v512_v60 = vpop.permute.xlu1 %511  ;;  %v514_v42 = vpop.permute.xlu0 %513 }
 0x165   : > { %v520_v57 = vsel %vm519_vm7, %v512_v60, %v2577_v41  ;;  %v522_v50 = vsel %vm519_vm7, %v508_v22, %v512_v60  ;;  %v521_v33 = vsel %vm519_vm7, %v514_v42, %v2538_v58  ;;  %v523_v31 = vsel %vm519_vm7, %v2662_v4, %v514_v42 }
 0x166   : > { %v693_v7 = vmul.f32 %v521_v33, %v419_v39  ;;  %v692_v63 = vmul.f32 %v523_v31, %v418_v47  ;;  %v498_v41 = vsel %vm494_vm8, %v2673_v6, %v487_v17  ;;  %v689_v45 = vmul.f32 %v520_v57, %v415_v13 }
 0x167   : > { %v688_v58 = vmul.f32 %v522_v50, %v414_v48  ;;  %v685_v4 = vmul.f32 %v496_v8, %v411_v51  ;;  %v684_v40 = vmul.f32 %v498_v41, %v410_v16 }
 0x168   : > { %900 = vmatpush.msrb.mxu1 %v692_v63  ;;  %952 = vmatpush.msra.mxu3 %v693_v7 }
 0x169   : > { %855 = vmatmul.f32.gmra.mxu2 %v2671_v9 }
 0x16a   : > { %901 = vmatpush.msrb.mxu1 %v688_v58  ;;  %953 = vmatpush.msra.mxu3 %v689_v45 }
 0x16b   : > { %1616 = vmatmul.msk.f32.gmra.mxu0 %vm774_vm5, %v2544_v62  ;;  %v879_v62 = vpop.f32.mrf.mxu3 }
 0x16c   : > { %902 = vmatpush.msrb.mxu1 %v684_v40  ;;  %954 = vmatpush.msra.mxu3 %v685_v4  ;;  %v485_v49 = vpop.permute.xlu0 %484 }
 0x16d   : > { %v495_v6 = vsel %vm494_vm8, %v485_v49, %v2548_v1  ;;  %v497_v32 = vsel %vm494_vm8, %v481_v25, %v485_v49 }
 0x16e   : > { %v681_v29 = vmul.f32 %v495_v6, %v407_v28  ;;  %v680_v30 = vmul.f32 %v497_v32, %v406_v52  ;;  %v2773_v6 = vld [vmem:[%s2172_s16 + $0x30] sm:$0xff] }
 0x170   : > { %903 = vmatpush.msrb.mxu1 %v680_v30  ;;  %955 = vmatpush.msra.mxu3 %v681_v29 }
 0x171   : > { %904 = vmatmul.f32.vlgmr.msrb.gmra.mxu1 %v2646_v24  ;;  %956 = vmatmul.f32.vlgmr.msra.gmra.mxu3 %v2646_v24 }
 0x172   : > { %858 = vmatmul.f32.gmra.mxu2 %v2691_v23 }
 0x173   : > { %1617 = vmatmul.msk.f32.gmra.mxu0 %vm774_vm5, %v2567_v38 }
 0x179   : > { %907 = vmatmul.f32.gmra.mxu1 %v2671_v9  ;;  %959 = vmatmul.f32.gmra.mxu3 %v2671_v9 }
 0x181   : > { %910 = vmatmul.f32.gmra.mxu1 %v2691_v23  ;;  %962 = vmatmul.f32.gmra.mxu3 %v2691_v23 }
 0x192   : > { %v2745_v24 = vpop.f32.mrf.mxu3 }
 0x1a0   : > { %v762_v1 = vpop.permute.xlu1 %761  ;;  %v2747_v18 = vpop.f32.mrf.mxu3 }
 0x1a8   : > { %v931_v3 = vpop.f32.mrf.mxu3 }
 0x1b0   : > { %v2756_v26 = vpop.f32.mrf.mxu3 }
 0x1b9   : > { %v2768_v0 = vpop.f32.mrf.mxu3 }
 0x1bd   : > { %v827_v34 = vpop.f32.mrf.mxu1 }
 0x1c6   : > { %v801_v22 = vpop.f32.mrf.mxu0 }
 0x1c7   : > { %v802_v37 = vadd.f32 %v801_v22, %v762_v1  ;;  %v2749_v9 = vpop.f32.mrf.mxu1 }
 0x1c9   : > { %v828_v35 = vadd.f32 %v827_v34, %v802_v37 }
 0x1cb   : > { %v1618_v59 = vmul.f32 -1.442695, %v828_v35 }
 0x1cd   : > { %1731 = vpow2.f32 %v1618_v59 }
 0x1ce   : > { %v2764_v44 = vpop.f32.mrf.mxu0 }
 0x1cf   : > { %v2751_v21 = vpop.f32.mrf.mxu1 }
 0x1d3   : > { %v1732_v56 = vpop.eup %1731 }
 0x1d4   : > { %v1004_v38 = vadd.f32 1.0, %v1732_v56 }
 0x1d6   : > { %1733 = vrcp.f32 %v1004_v38  ;;  %v1019_v23 = vand.u32 2147483648, %v1004_v38  ;;  %vm1013_vm9 = vweird.f32 %v1004_v38  ;;  %v1017_v55 = vand.u32 2147483647, %v1004_v38  ;;  %v2770_v39 = vpop.f32.mrf.mxu0 }
 0x1d8   : > { %v1020_v54 = vor.u32 1.1754944e-38, %v1019_v23  ;;  %vm1018_vm12 = vcmp.eq.f32.partialorder %v1017_v55, 8.507059e+37 }
 0x1dc   : > { %v1734_v15 = vpop.eup %1733 }
 0x1dd   : > { %v1009_v27 = vmul.f32 %v1734_v15, %v1004_v38  ;;  %vm1014_vm10 = vweird.f32 %v1734_v15  ;;  %v2791_v38 = vld [vmem:[%s2172_s16 + $0x28] sm:$0xff] }
 0x1de   : > { %vm1015_vm11 = vmor %vm1013_vm9, %vm1014_vm10 }
 0x1df   : > { %v1010_v43 = vsub.f32 1.0, %v1009_v27  ;;  %v983_v33 = vpop.f32.mrf.mxu0 }
 0x1e1   : > { %v1011_v36 = vmul.f32 %v1734_v15, %v1010_v43 }
 0x1e3   : > { %v1012_v25 = vadd.f32 %v1734_v15, %v1011_v36 }
 0x1e4   : > { %v853_v2 = vpop.f32.mrf.mxu2 }
 0x1e5   : > { %v1016_v12 = vsel %vm1015_vm11, %v1734_v15, %v1012_v25  ;;  %v854_v53 = vadd.f32 %v853_v2, %v762_v1  ;;  %v2815_v2 = vld [vmem:[%s2172_s16 + $0x38] sm:$0xff] }
 0x1e6   : > { %v1021_v20 = vsel %vm1018_vm12, %v1020_v54, %v1016_v12 }
 0x1e7   : > { %v2754_v10 = vmul.f32 %v1021_v20, %v2209_v5  ;;  %v880_v11 = vadd.f32 %v879_v62, %v854_v53  ;;  %v757_v53 = vld [vmem:[%s3135_s4 + $0x8] sm:$0xff] }
 0x1e9   : > { %1268 = vrot.lane.b32.xlu2 %v2754_v10, %s1993_s2  ;;  %1244 = vrot.lane.b32.xlu0 %v2754_v10, %s1995_s30  ;;  %v1619_v61 = vmul.f32 -1.442695, %v880_v11  ;;  %v758_v11 = vld [vmem:[%s3135_s4 + $0x10] sm:$0xff] }
 0x1ea   : > { %1256 = vrot.lane.b32.xlu1 %v2754_v10, %s1994_s19 }
 0x1eb   : > { %1735 = vpow2.f32 %v1619_v61 }
 0x1ee   : > { %v905_v19 = vpop.f32.mrf.mxu1 }
 0x1ef   : > { %v906_v46 = vadd.f32 %v905_v19, %v762_v1 }
 0x1f1   : > { %v932_v5 = vadd.f32 %v931_v3, %v906_v46  ;;  %1232 = vrot.lane.b32.xlu2 %v2754_v10, %s1996_s14  ;;  %v1736_v47 = vpop.eup %1735 }
 0x1f2   : > { %v1005_v57 = vadd.f32 1.0, %v1736_v47 }
 0x1f3   : > { %v1620_v17 = vmul.f32 -1.442695, %v932_v5 }
 0x1f4   : > { %v957_v13 = vpop.f32.mrf.mxu3  ;;  %v1034_v22 = vand.u32 2147483648, %v1005_v57  ;;  %vm1028_vm10 = vweird.f32 %v1005_v57  ;;  %v1032_v34 = vand.u32 2147483647, %v1005_v57 }
 0x1f5   : > { %1737 = vpow2.f32 %v1620_v17  ;;  %v958_v50 = vadd.f32 %v957_v13, %v762_v1 }
 0x1f6   : > { %v1035_v35 = vor.u32 1.1754944e-38, %v1034_v22  ;;  %vm1033_vm12 = vcmp.eq.f32.partialorder %v1032_v34, 8.507059e+37  ;;  %v1172_v34 = vld [vmem:[#allocation10 + $0xc0] sm:$0xff] }
 0x1f7   : > { %v984_v31 = vadd.f32 %v983_v33, %v958_v50 }
 0x1f9   : > { %v1621_v8 = vmul.f32 -1.442695, %v984_v31 }
 0x1fb   : > { %v1738_v60 = vpop.eup %1737 }
 0x1fc   : > { %v1006_v42 = vadd.f32 1.0, %v1738_v60 }
 0x1fe   : > { %1739 = vrcp.f32 %v1006_v42  ;;  %v1049_v41 = vand.u32 2147483648, %v1006_v42  ;;  %v1047_v45 = vand.u32 2147483647, %v1006_v42  ;;  %vm1043_vm14 = vweird.f32 %v1006_v42 }
 0x1ff   : > { %1741 = vrcp.f32 %v1005_v57 }
 0x200   : > { %1743 = vpow2.f32 %v1621_v8  ;;  %v1050_v40 = vor.u32 1.1754944e-38, %v1049_v41  ;;  %vm1048_vm5 = vcmp.eq.f32.partialorder %v1047_v45, 8.507059e+37  ;;  %v1180_v8 = vld [vmem:[#allocation10 + $0x100] sm:$0xff]  ;;  %v1177_v41 = vld [vmem:[#allocation10 + $0xe8] sm:$0xff] }
 0x204   : > { %v1740_v48 = vpop.eup %1739 }
 0x205   : > { %v1039_v7 = vmul.f32 %v1740_v48, %v1006_v42  ;;  %v1742_v63 = vpop.eup %1741  ;;  %vm1044_vm13 = vweird.f32 %v1740_v48 }
 0x206   : > { %v1024_v58 = vmul.f32 %v1742_v63, %v1005_v57  ;;  %vm1045_vm15 = vmor %vm1043_vm14, %vm1044_vm13  ;;  %v1744_v29 = vpop.eup %1743  ;;  %vm1029_vm9 = vweird.f32 %v1742_v63 }
 0x207   : > { %v1040_v51 = vsub.f32 1.0, %v1039_v7  ;;  %v1007_v62 = vadd.f32 1.0, %v1744_v29  ;;  %vm1030_vm11 = vmor %vm1028_vm10, %vm1029_vm9  ;;  %v1181_v7 = vld [vmem:[#allocation10 + $0x108] sm:$0xff]  ;;  %vm1317_vm9 = vcmask 588800  }
 0x208   : > { %v1025_v52 = vsub.f32 1.0, %v1024_v58 }
 0x209   : > { %v1041_v16 = vmul.f32 %v1740_v48, %v1040_v51  ;;  %1745 = vrcp.f32 %v1007_v62  ;;  %v1064_v55 = vand.u32 2147483648, %v1007_v62  ;;  %vm1058_vm14 = vweird.f32 %v1007_v62 }
 0x20a   : > { %v1026_v30 = vmul.f32 %v1742_v63, %v1025_v52  ;;  %v1062_v36 = vand.u32 2147483647, %v1007_v62  ;;  %v1176_v52 = vld [vmem:[#allocation10 + $0xe0] sm:$0xff] }
 0x20b   : > { %v1042_v4 = vadd.f32 %v1740_v48, %v1041_v16  ;;  %v1065_v25 = vor.u32 1.1754944e-38, %v1064_v55 }
 0x20c   : > { %v1027_v1 = vadd.f32 %v1742_v63, %v1026_v30 }
 0x20d   : > { %v1046_v28 = vsel %vm1045_vm15, %v1740_v48, %v1042_v4 }
 0x20e   : > { %v1051_v49 = vsel %vm1048_vm5, %v1050_v40, %v1046_v28  ;;  %v1031_v37 = vsel %vm1030_vm11, %v1742_v63, %v1027_v1  ;;  %vm1063_vm5 = vcmp.eq.f32.partialorder %v1062_v36, 8.507059e+37  ;;  %v1165_v36 = vld [vmem:[#allocation10 + $0x88] sm:$0xff] }
 0x20f   : > { %v2776_v32 = vmul.f32 %v2773_v6, %v1051_v49  ;;  %v1036_v59 = vsel %vm1033_vm12, %v1035_v35, %v1031_v37  ;;  %v1746_v56 = vpop.eup %1745  ;;  %v1169_v37 = vld [vmem:[#allocation10 + $0xa8] sm:$0xff] }
 0x210   : > { %v2794_v15 = vmul.f32 %v2791_v38, %v1036_v59  ;;  %v1054_v27 = vmul.f32 %v1746_v56, %v1007_v62  ;;  %vm1059_vm13 = vweird.f32 %v1746_v56  ;;  %v1173_v62 = vld [vmem:[#allocation10 + $0xc8] sm:$0xff] }
 0x211   : > { %1248 = vrot.lane.b32.xlu0 %v2776_v32, %s1995_s30  ;;  %1272 = vrot.lane.b32.xlu1 %v2776_v32, %s1993_s2  ;;  %vm1060_vm15 = vmor %vm1058_vm14, %vm1059_vm13 }
 0x212   : > { %1260 = vrot.lane.b32.xlu2 %v2776_v32, %s1994_s19  ;;  %v1055_v23 = vsub.f32 1.0, %v1054_v27 }
 0x214   : > { %v1056_v3 = vmul.f32 %v1746_v56, %v1055_v23 }
 0x216   : > { %v1057_v43 = vadd.f32 %v1746_v56, %v1056_v3  ;;  %v1168_v3 = vld [vmem:[#allocation10 + $0xa0] sm:$0xff] }
 0x218   : > { %v1061_v54 = vsel %vm1060_vm15, %v1746_v56, %v1057_v43 }
 0x219   : > { %1196 = vrot.lane.b32.xlu0 %v2754_v10, %s1999_s25  ;;  %1220 = vrot.lane.b32.xlu1 %v2754_v10, %s1997_s20  ;;  %v1066_v12 = vsel %vm1063_vm5, %v1065_v25, %v1061_v54  ;;  %v1164_v25 = vld [vmem:[#allocation10 + $0x80] sm:$0xff] }
 0x21a   : > { %1208 = vrot.lane.b32.xlu2 %v2754_v10, %s1998_s24  ;;  %v2818_v20 = vmul.f32 %v2815_v2, %v1066_v12  ;;  %v1161_v12 = vld [vmem:[#allocation10 + $0x68] sm:$0xff] }
 0x221   : > { %1184 = vrot.lane.b32.xlu0 %v2754_v10, %s2000_s29  ;;  %1236 = vrot.lane.b32.xlu1 %v2776_v32, %s1996_s14 }
 0x222   : > { %1258 = vrot.lane.b32.xlu2 %v2794_v15, %s1994_s19 }
 0x229   : > { %1270 = vrot.lane.b32.xlu0 %v2794_v15, %s1993_s2  ;;  %1224 = vrot.lane.b32.xlu1 %v2776_v32, %s1997_s20 }
 0x22a   : > { %1222 = vrot.lane.b32.xlu2 %v2794_v15, %s1997_s20 }
 0x231   : > { %1234 = vrot.lane.b32.xlu0 %v2794_v15, %s1996_s14  ;;  %1246 = vrot.lane.b32.xlu1 %v2794_v15, %s1995_s30 }
 0x232   : > { %1198 = vrot.lane.b32.xlu2 %v2794_v15, %s1999_s25 }
 0x239   : > { %1210 = vrot.lane.b32.xlu0 %v2794_v15, %s1998_s24  ;;  %1262 = vrot.lane.b32.xlu1 %v2818_v20, %s1994_s19 }
 0x23a   : > { %1226 = vrot.lane.b32.xlu2 %v2818_v20, %s1997_s20 }
 0x241   : > { %1274 = vrot.lane.b32.xlu0 %v2818_v20, %s1993_s2  ;;  %1202 = vrot.lane.b32.xlu1 %v2818_v20, %s1999_s25 }
 0x242   : > { %1250 = vrot.lane.b32.xlu2 %v2818_v20, %s1995_s30 }
 0x243   : > { %v2852_v19 = vpop.permute.xlu2 %1268 }
 0x249   : > { %1214 = vrot.lane.b32.xlu0 %v2818_v20, %s1998_s24  ;;  %1190 = vrot.lane.b32.xlu1 %v2818_v20, %s2000_s29 }
 0x24a   : > { %1238 = vrot.lane.b32.xlu2 %v2818_v20, %s1996_s14 }
 0x24b   : > { %v2854_v46 = vpop.permute.xlu2 %1232 }
 0x251   : > { %1212 = vrot.lane.b32.xlu0 %v2776_v32, %s1998_s24  ;;  %1186 = vrot.lane.b32.xlu1 %v2794_v15, %s2000_s29 }
 0x252   : > { %1200 = vrot.lane.b32.xlu2 %v2776_v32, %s1999_s25 }
 0x259   : > { %1188 = vrot.lane.b32.xlu0 %v2776_v32, %s2000_s29  ;;  %766 = vperm.xlu1 %1728, %v757_v53  }
 0x25a   : > { %771 = vperm.xlu2 %1729, %v758_v11  }
 0x25b   : > { %v2858_v5 = vpop.permute.xlu0 %1244 }
 0x25c   : > { %v2860_v17 = vpop.permute.xlu1 %1256 }
 0x26c   : > { %v2856_v61 = vpop.permute.xlu2 %1260 }
 0x274   : > { %v2862_v47 = vpop.permute.xlu2 %1208 }
 0x27c   : > { %v1259_v13 = vpop.permute.xlu2 %1258 }
 0x27d   : > { %v1265_v16 = vsel %vm644_vm0, %v1259_v13, %v2856_v61  ;;  %v1266_v40 = vsel %vm644_vm0, %v2860_v17, %v1259_v13 }
 0x27e   : > { %v1309_v29 = vmul.f32 %v1265_v16, %v1177_v41  ;;  %v1308_v30 = vmul.f32 %v1266_v40, %v1176_v52  ;;  %v1296_v41 = vmul.f32 %v1164_v25, %v2754_v10  ;;  %v1153_v40 = vld [vmem:[#allocation10 + $0x28] sm:$0xff] }
 0x283   : > { %v2864_v60 = vpop.permute.xlu0 %1248  ;;  %v2866_v42 = vpop.permute.xlu1 %1272 }
 0x284   : > { %v2870_v33 = vpop.permute.xlu2 %1222 }
 0x28b   : > { %v2868_v57 = vpop.permute.xlu0 %1196  ;;  %v1221_v50 = vpop.permute.xlu1 %1220 }
 0x28c   : > { %v2881_v45 = vpop.permute.xlu2 %1198  ;;  %v1230_v53 = vsel %vm569_vm4, %v1221_v50, %v2870_v33 }
 0x28d   : > { %v1293_v16 = vmul.f32 %v1230_v53, %v1161_v12  ;;  %v1149_v12 = vld [vmem:[#allocation10 + $0x8] sm:$0xff] }
 0x293   : > { %v2872_v31 = vpop.permute.xlu0 %1184  ;;  %v2874_v48 = vpop.permute.xlu1 %1236 }
 0x294   : > { %v2904_v43 = vpop.permute.xlu2 %1226 }
 0x295   : > { %v1231_v13 = vsel %vm569_vm4, %v2904_v43, %v1221_v50 }
 0x29b   : > { %v1271_v63 = vpop.permute.xlu0 %1270  ;;  %v2876_v51 = vpop.permute.xlu1 %1224 }
 0x29c   : > { %v1277_v58 = vsel %vm669_vm1, %v1271_v63, %v2866_v42  ;;  %v1278_v4 = vsel %vm669_vm1, %v2852_v19, %v1271_v63  ;;  %v1160_v63 = vld [vmem:[#allocation10 + $0x60] sm:$0xff] }
 0x29d   : > { %v1313_v28 = vmul.f32 %v1277_v58, %v1181_v7  ;;  %v1312_v49 = vmul.f32 %v1278_v4, %v1180_v8  ;;  %v1297_v7 = vmul.f32 %v1165_v36, %v2794_v15  ;;  %v1157_v8 = vld [vmem:[#allocation10 + $0x48] sm:$0xff]  ;;  %v1292_v50 = vmul.f32 %v1231_v13, %v1160_v63  ;;  %v1183_v63 = vld [vmem:[#allocation10 + $0x118] sm:$0xff] }
 0x29f   : > { %1348 = vmatpush.msra.mxu1 %v1313_v28  ;;  %1328 = vmatpush.msrb.mxu2 %v1312_v49  ;;  %v1206_v28 = vsel %vm519_vm7, %v2868_v57, %v2881_v45 }
 0x2a0   : > { %v1285_v10 = vmul.f32 %v1206_v28, %v1153_v40  ;;  %v1170_v40 = vld [vmem:[#allocation10 + $0xb0] sm:$0xff]  ;;  %v1179_v28 = vld [vmem:[#allocation10 + $0xf8] sm:$0xff] }
 0x2a1   : > { %1349 = vmatpush.msra.mxu1 %v1309_v29  ;;  %1329 = vmatpush.msrb.mxu2 %v1308_v30  ;;  %v1251_v30 = vpop.permute.xlu2 %1250 }
 0x2a3   : > { %v1235_v1 = vpop.permute.xlu0 %1234  ;;  %v1247_v22 = vpop.permute.xlu1 %1246 }
 0x2a4   : > { %v1241_v35 = vsel %vm594_vm3, %v1235_v1, %v2874_v48  ;;  %v1253_v59 = vsel %vm619_vm2, %v1247_v22, %v2864_v60  ;;  %v1254_v56 = vsel %vm619_vm2, %v2858_v5, %v1247_v22  ;;  %v1242_v27 = vsel %vm594_vm3, %v2854_v46, %v1235_v1 }
 0x2a5   : > { %v1305_v23 = vmul.f32 %v1253_v59, %v1173_v62  ;;  %v1304_v55 = vmul.f32 %v1254_v56, %v1172_v34  ;;  %v1301_v54 = vmul.f32 %v1241_v35, %v1169_v37  ;;  %v1300_v11 = vmul.f32 %v1242_v27, %v1168_v3  ;;  %v1156_v62 = vld [vmem:[#allocation10 + $0x40] sm:$0xff]  ;;  %v1182_v3 = vld [vmem:[#allocation10 + $0x110] sm:$0xff] }
 0x2a6   : > { %v1152_v35 = vld [vmem:[#allocation10 + $0x20] sm:$0xff] }
 0x2a7   : > { %1350 = vmatpush.msra.mxu1 %v1305_v23  ;;  %1330 = vmatpush.msrb.mxu2 %v1304_v55  ;;  %v1148_v27 = vld [vmem:[#allocation10] sm:$0xff] }
 0x2a9   : > { %1351 = vmatpush.msra.mxu1 %v1301_v54  ;;  %1331 = vmatpush.msrb.mxu2 %v1300_v11  ;;  %v1239_v55 = vpop.permute.xlu2 %1238  ;;  %v1178_v54 = vld [vmem:[#allocation10 + $0xf0] sm:$0xff] }
 0x2ab   : > { %v2914_v58 = vpop.permute.xlu0 %1210  ;;  %v1263_v4 = vpop.permute.xlu1 %1262  ;;  %1352 = vmatpush.msra.mxu1 %v1297_v7  ;;  %1332 = vmatpush.msrb.mxu2 %v1296_v41  ;;  %v1252_v7 = vsel %vm619_vm2, %v2864_v60, %v1251_v30  ;;  %v1240_v60 = vsel %vm594_vm3, %v2874_v48, %v1239_v55 }
 0x2ac   : > { %v1218_v15 = vsel %vm544_vm6, %v2862_v47, %v2914_v58  ;;  %v1264_v25 = vsel %vm644_vm0, %v2856_v61, %v1263_v4 }
 0x2ad   : > { %v1289_v52 = vmul.f32 %v1218_v15, %v1157_v8  ;;  %1353 = vmatpush.msra.mxu1 %v1293_v16  ;;  %1333 = vmatpush.msrb.mxu2 %v1292_v50  ;;  %v1310_v61 = vmul.f32 %v1264_v25, %v1178_v54  ;;  %v1150_v25 = vld [vmem:[#allocation10 + $0x10] sm:$0xff] }
 0x2af   : > { %1354 = vmatpush.msra.mxu1 %v1289_v52  ;;  %v1255_v52 = vsel %vm619_vm2, %v1251_v30, %v2858_v5 }
 0x2b1   : > { %1355 = vmatpush.msra.mxu1 %v1285_v10  ;;  %v1166_v10 = vld [vmem:[#allocation10 + $0x90] sm:$0xff]  ;;  %v1201_v30 = vpop.permute.xlu2 %1200 }
 0x2b3   : > { %v1275_v49 = vpop.permute.xlu0 %1274  ;;  %v2924_v29 = vpop.permute.xlu1 %1202 }
 0x2b4   : > { %v1207_v34 = vsel %vm519_vm7, %v2924_v29, %v2868_v57  ;;  %v1276_v57 = vsel %vm669_vm1, %v2866_v42, %v1275_v49  ;;  %v1174_v42 = vld [vmem:[#allocation10 + $0xd0] sm:$0xff]  ;;  %v1279_v8 = vsel %vm669_vm1, %v1275_v49, %v2852_v19  ;;  %v1267_v19 = vsel %vm644_vm0, %v1263_v4, %v2860_v17  ;;  %v1171_v4 = vld [vmem:[#allocation10 + $0xb8] sm:$0xff] }
 0x2b5   : > { %v1284_v23 = vmul.f32 %v1207_v34, %v1152_v35  ;;  %v1314_v53 = vmul.f32 %v1276_v57, %v1182_v3  ;;  %v1306_v15 = vmul.f32 %v1252_v7, %v1174_v42  ;;  %v1315_v50 = vmul.f32 %v1279_v8, %v1183_v63  ;;  %v1158_v35 = vld [vmem:[#allocation10 + $0x50] sm:$0xff]  ;;  %v1163_v3 = vld [vmem:[#allocation10 + $0x78] sm:$0xff]  ;;  %v856_v63 = vpop.f32.mrf.mxu2 }
 0x2b6   : > { %v1302_v49 = vmul.f32 %v1240_v60, %v1170_v40  ;;  %v1311_v48 = vmul.f32 %v1267_v19, %v1179_v28  ;;  %v1229_v17 = vsel %vm569_vm4, %v2870_v33, %v2876_v51  ;;  %v1243_v34 = vsel %vm594_vm3, %v1239_v55, %v2854_v46  ;;  %v1154_v57 = vld [vmem:[#allocation10 + $0x30] sm:$0xff]  ;;  %v1151_v7 = vld [vmem:[#allocation10 + $0x18] sm:$0xff]  ;;  %v960_v40 = vpop.f32.mrf.mxu3  ;;  %v908_v19 = vpop.f32.mrf.mxu1 }
 0x2b7   : > { %v1228_v46 = vsel %vm569_vm4, %v2876_v51, %v2904_v43 }
 0x2b8   : > { %v1295_v51 = vmul.f32 %v1228_v46, %v1163_v3 }
 0x2bb   : > { %v2926_v1 = vpop.permute.xlu0 %1214  ;;  %v2928_v22 = vpop.permute.xlu1 %1190 }
 0x2bc   : > { %v1219_v37 = vsel %vm544_vm6, %v2926_v1, %v2862_v47  ;;  %v1195_v56 = vsel %vm494_vm8, %v2928_v22, %v2872_v31  ;;  %v2948_v47 = vld [vmem:[%s3134_s3] sm:$0xff] }
 0x2bd   : > { %v1288_v59 = vmul.f32 %v1219_v37, %v1156_v62  ;;  %v1280_v36 = vmul.f32 %v1195_v56, %v1148_v27  ;;  %v1162_v62 = vld [vmem:[#allocation10 + $0x70] sm:$0xff]  ;;  %v1298_v37 = vmul.f32 %v1166_v10, %v2776_v32  ;;  %v1167_v56 = vld [vmem:[#allocation10 + $0x98] sm:$0xff]  ;;  %v1205_v32 = vsel %vm519_vm7, %v2881_v45, %v1201_v30 }
 0x2be   : > { %v1294_v27 = vmul.f32 %v1229_v17, %v1162_v62  ;;  %v1286_v43 = vmul.f32 %v1205_v32, %v1154_v57  ;;  %v1204_v45 = vsel %vm519_vm7, %v1201_v30, %v2924_v29 }
 0x2bf   : > { %1334 = vmatpush.msrb.mxu2 %v1288_v59 }
 0x2c1   : > { %1335 = vmatpush.msrb.mxu2 %v1284_v23  ;;  %v1303_v23 = vmul.f32 %v1243_v34, %v1171_v4 }
 0x2c3   : > { %v1213_v11 = vpop.permute.xlu0 %1212  ;;  %v1187_v13 = vpop.permute.xlu1 %1186  ;;  %1336 = vmatpush.msrb.mxu2 %v1280_v36  ;;  %v1159_v36 = vld [vmem:[#allocation10 + $0x58] sm:$0xff] }
 0x2c4   : > { %v1194_v41 = vsel %vm494_vm8, %v2872_v31, %v1187_v13  ;;  %1626 = vmatmul.msk.f32.vlgmr.msrb.gmra.mxu2 %vm1317_vm9, %v2948_v47  ;;  %v1175_v31 = vld [vmem:[#allocation10 + $0xd8] sm:$0xff]  ;;  %v1217_v59 = vsel %vm544_vm6, %v2914_v58, %v1213_v11  ;;  %v1299_v58 = vmul.f32 %v1167_v56, %v2818_v20  ;;  %v1216_v54 = vsel %vm544_vm6, %v1213_v11, %v2926_v1  ;;  %v3019_v56 = vpop.permute.xlu2 %771 }
 0x2c5   : > { %v1281_v16 = vmul.f32 %v1194_v41, %v1149_v12  ;;  %1368 = vmatpush.msra.mxu2 %v1314_v53  ;;  %v1307_v5 = vmul.f32 %v1255_v52, %v1175_v31  ;;  %v1290_v55 = vmul.f32 %v1217_v59, %v1158_v35  ;;  %v1155_v53 = vld [vmem:[#allocation10 + $0x38] sm:$0xff]  ;;  %v1291_v42 = vmul.f32 %v1216_v54, %v1159_v36  ;;  %v859_v59 = vpop.f32.mrf.mxu2 }
 0x2c6   : > { %v1287_v11 = vmul.f32 %v1204_v45, %v1155_v53  ;;  %v808_v3 = vadd.f32 %v2770_v39, %v3019_v56 }
 0x2c7   : > { %1369 = vmatpush.msra.mxu2 %v1310_v61  ;;  %1356 = vmatpush.msra.mxu1 %v1281_v16 }
 0x2c8   : > { %1627 = vmatmul.msk.f32.vlgmr.msra.gmra.mxu1 %vm1317_vm9, %v2948_v47  ;;  %v834_v53 = vadd.f32 %v2751_v21, %v808_v3 }
 0x2c9   : > { %1370 = vmatpush.msra.mxu2 %v1306_v15  ;;  %1388 = vmatpush.msrb.mxu1 %v1315_v50  ;;  %v986_v15 = vpop.f32.mrf.mxu0 }
 0x2cb   : > { %1371 = vmatpush.msra.mxu2 %v1302_v49  ;;  %1389 = vmatpush.msrb.mxu1 %v1311_v48  ;;  %v1189_v33 = vpop.permute.xlu0 %1188  ;;  %v767_v29 = vpop.permute.xlu1 %766 }
 0x2cc   : > { %v1193_v12 = vsel %vm494_vm8, %v1187_v13, %v1189_v33  ;;  %v1192_v1 = vsel %vm494_vm8, %v1189_v33, %v2928_v22  ;;  %v857_v8 = vadd.f32 %v856_v63, %v767_v29  ;;  %v805_v41 = vadd.f32 %v2764_v44, %v767_v29 }
 0x2cd   : > { %1372 = vmatpush.msra.mxu2 %v1298_v37  ;;  %1390 = vmatpush.msrb.mxu1 %v1307_v5  ;;  %v1282_v20 = vmul.f32 %v1193_v12, %v1150_v25  ;;  %v1283_v13 = vmul.f32 %v1192_v1, %v1151_v7  ;;  %v961_v60 = vadd.f32 %v960_v40, %v767_v29  ;;  %v3045_v7 = vld [vmem:[%s2193_s21] sm:$0xf] }
 0x2ce   : > { %v883_v14 = vadd.f32 %v2745_v24, %v857_v8  ;;  %v831_v22 = vadd.f32 %v2749_v9, %v805_v41  ;;  %v860_v33 = vadd.f32 %v859_v59, %v3019_v56  ;;  %v3052_v8 = vsub.f32 1.0, %v3045_v7 }
 0x2cf   : > { %1373 = vmatpush.msra.mxu2 %v1294_v27  ;;  %1391 = vmatpush.msrb.mxu1 %v1303_v23  ;;  %v987_v52 = vadd.f32 %v986_v15, %v961_v60  ;;  %v963_v60 = vpop.f32.mrf.mxu3 }
 0x2d0   : > { %v1623_v61 = vmul.f32 -1.442695, %v883_v14  ;;  %v1622_v16 = vmul.f32 -1.442695, %v831_v22  ;;  %v886_v25 = vadd.f32 %v2747_v18, %v860_v33  ;;  %v1442_v40 = vperm.slane %v3052_v8, 1 }
 0x2d1   : > { %1374 = vmatpush.msra.mxu2 %v1290_v55  ;;  %1392 = vmatpush.msrb.mxu1 %v1299_v58  ;;  %v1625_v24 = vmul.f32 -1.442695, %v987_v52 }
 0x2d2   : > { %1747 = vpow2.f32 %v1623_v61 }
 0x2d3   : > { %1375 = vmatpush.msra.mxu2 %v1286_v43  ;;  %1393 = vmatpush.msrb.mxu1 %v1295_v51  ;;  %1749 = vpow2.f32 %v1622_v16 }
 0x2d5   : > { %1376 = vmatpush.msra.mxu2 %v1282_v20  ;;  %1394 = vmatpush.msrb.mxu1 %v1291_v42 }
 0x2d6   : > { %1628 = vmatmul.msk.f32.vlgmr.msra.gmra.mxu2 %vm1317_vm9, %v2948_v47 }
 0x2d7   : > { %1395 = vmatpush.msrb.mxu1 %v1287_v11 }
 0x2d8   : > { %v1748_v28 = vpop.eup %1747 }
 0x2d9   : > { %1396 = vmatpush.msrb.mxu1 %v1283_v13  ;;  %v1750_v50 = vpop.eup %1749  ;;  %v1081_v31 = vadd.f32 1.0, %v1748_v28 }
 0x2da   : > { %1629 = vmatmul.msk.f32.vlgmr.msrb.gmra.mxu1 %vm1317_vm9, %v2948_v47  ;;  %v909_v47 = vadd.f32 %v908_v19, %v767_v29  ;;  %v1080_v10 = vadd.f32 1.0, %v1750_v50 }
 0x2db   : > { %1751 = vrcp.f32 %v1081_v31  ;;  %v1110_v57 = vand.u32 2147483648, %v1081_v31  ;;  %vm1104_vm2 = vweird.f32 %v1081_v31  ;;  %v1108_v58 = vand.u32 2147483647, %v1081_v31 }
 0x2dc   : > { %v935_v44 = vadd.f32 %v2756_v26, %v909_v47  ;;  %1753 = vrcp.f32 %v1080_v10  ;;  %v3017_v26 = vpop.f32.mrf.mxu1  ;;  %v1093_v36 = vand.u32 2147483647, %v1080_v10  ;;  %v1095_v54 = vand.u32 2147483648, %v1080_v10 }
 0x2dd   : > { %1755 = vpow2.f32 %v1625_v24  ;;  %vm1089_vm4 = vweird.f32 %v1080_v10  ;;  %v1111_v42 = vor.u32 1.1754944e-38, %v1110_v57  ;;  %vm1109_vm7 = vcmp.eq.f32.partialorder %v1108_v58, 8.507059e+37 }
 0x2de   : > { %v1624_v9 = vmul.f32 -1.442695, %v935_v44  ;;  %vm1094_vm8 = vcmp.eq.f32.partialorder %v1093_v36, 8.507059e+37  ;;  %v1096_v11 = vor.u32 1.1754944e-38, %v1095_v54  ;;  %v1428_v47 = vperm.slane %v3045_v7, 1 }
 0x2df   : > { %v964_v24 = vadd.f32 %v963_v60, %v3019_v56 }
 0x2e0   : > { %1757 = vpow2.f32 %v1624_v9 }
 0x2e1   : > { %v1752_v49 = vpop.eup %1751 }
 0x2e2   : > { %v1754_v48 = vpop.eup %1753  ;;  %v1100_v62 = vmul.f32 %v1752_v49, %v1081_v31  ;;  %vm1105_vm0 = vweird.f32 %v1752_v49  ;;  %v1441_v31 = vperm.slane %v3052_v8, 0 }
 0x2e3   : > { %v1756_v17 = vpop.eup %1755  ;;  %v1085_v4 = vmul.f32 %v1754_v48, %v1080_v10  ;;  %vm1090_vm1 = vweird.f32 %v1754_v48  ;;  %vm3029_vm3 = vmor %vm1104_vm2, %vm1105_vm0  ;;  %v1774_v10 = vld [vmem:[%s2172_s16 + $0x20] sm:$0xff] }
 0x2e4   : > { %v3013_v5 = vadd.f32 1.0, %v1756_v17  ;;  %v1101_v30 = vsub.f32 1.0, %v1100_v62  ;;  %vm3038_vm6 = vmor %vm1089_vm4, %vm1090_vm1  ;;  %v1427_v17 = vperm.slane %v3045_v7, 0  ;;  %v1449_v59 = vmul.f32 %v1774_v10, %v1441_v31 }
 0x2e5   : > { %v1086_v37 = vsub.f32 1.0, %v1085_v4  ;;  %v989_v4 = vpop.f32.mrf.mxu0 }
 0x2e6   : > { %v1758_v34 = vpop.eup %1757  ;;  %1759 = vrcp.f32 %v3013_v5  ;;  %v1102_v27 = vmul.f32 %v1752_v49, %v1101_v30  ;;  %vm1134_vm10 = vweird.f32 %v3013_v5 }
 0x2e7   : > { %v3015_v35 = vadd.f32 1.0, %v1758_v34  ;;  %v1087_v23 = vmul.f32 %v1754_v48, %v1086_v37  ;;  %v912_v34 = vadd.f32 %v3017_v26, %v3019_v56  ;;  %v1138_v56 = vand.u32 2147483647, %v3013_v5 }
 0x2e8   : > { %v1103_v46 = vadd.f32 %v1752_v49, %v1102_v27 }
 0x2e9   : > { %1761 = vrcp.f32 %v3015_v35  ;;  %v1088_v32 = vadd.f32 %v1754_v48, %v1087_v23  ;;  %v990_v23 = vadd.f32 %v989_v4, %v964_v24  ;;  %vm1119_vm14 = vweird.f32 %v3015_v35 }
 0x2ea   : > { %v1107_v51 = vsel %vm3029_vm3, %v1752_v49, %v1103_v46  ;;  %v1125_v46 = vand.u32 2147483648, %v3015_v35  ;;  %v938_v12 = vadd.f32 %v2768_v0, %v912_v34  ;;  %vm1139_vm5 = vcmp.eq.f32.partialorder %v1138_v56, 8.507059e+37 }
 0x2eb   : > { %v1092_v1 = vsel %vm3038_vm6, %v1754_v48, %v1088_v32  ;;  %v1112_v29 = vsel %vm1109_vm7, %v1111_v42, %v1107_v51  ;;  %v1450_v48 = vmul.f32 %v2791_v38, %v1442_v40  ;;  %v1123_v32 = vand.u32 2147483647, %v3015_v35 }
 0x2ec   : > { %v3026_v55 = vpop.eup %1759  ;;  %v1097_v41 = vsel %vm1094_vm8, %v1096_v11, %v1092_v1  ;;  %v1410_v22 = vsub.f32 1.0, %v1112_v29 }
 0x2ed   : > { %v1130_v18 = vmul.f32 %v3026_v55, %v3013_v5  ;;  %v1409_v61 = vsub.f32 1.0, %v1097_v41  ;;  %vm1135_vm11 = vweird.f32 %v3026_v55  ;;  %vm1124_vm9 = vcmp.eq.f32.partialorder %v1123_v32, 8.507059e+37 }
 0x2ee   : > { %v1414_v15 = vmul.f32 %v2791_v38, %v1410_v22  ;;  %v1140_v38 = vand.u32 2147483648, %v3013_v5  ;;  %vm3074_vm13 = vmor %vm1134_vm10, %vm1135_vm11  ;;  %v1429_v22 = vperm.slane %v3045_v7, 2 }
 0x2ef   : > { %v3033_v39 = vpop.eup %1761  ;;  %v1131_v14 = vsub.f32 1.0, %v1130_v18  ;;  %v1413_v44 = vmul.f32 %v1774_v10, %v1409_v61 }
 0x2f0   : > { %v1115_v63 = vmul.f32 %v3033_v39, %v3015_v35  ;;  %vm1120_vm12 = vweird.f32 %v3033_v39 }
 0x2f1   : > { %v1132_v19 = vmul.f32 %v3026_v55, %v1131_v14  ;;  %vm1121_vm15 = vmor %vm1119_vm14, %vm1120_vm12 }
 0x2f2   : > { %v1116_v16 = vsub.f32 1.0, %v1115_v63 }
 0x2f3   : > { %v1133_v27 = vadd.f32 %v3026_v55, %v1132_v19 }
 0x2f4   : > { %v1117_v9 = vmul.f32 %v3033_v39, %v1116_v16 }
 0x2f5   : > { %v1137_v36 = vsel %vm3074_vm13, %v3026_v55, %v1133_v27 }
 0x2f6   : > { %v1118_v33 = vadd.f32 %v3033_v39, %v1117_v9 }
 0x2f8   : > { %v1122_v51 = vsel %vm1121_vm15, %v3033_v39, %v1118_v33  ;;  %v1430_v39 = vperm.slane %v3045_v7, 3 }
 0x345   : > { %v1358_v43 = vpop.f32.mrf.mxu1 }
 0x346   : > { %v1402_v20 = vadd.f32 %v1358_v43, %v886_v25  ;;  %v1141_v25 = vor.u32 1.1754944e-38, %v1140_v38  ;;  %v1126_v43 = vor.u32 1.1754944e-38, %v1125_v46 }
 0x347   : > { %v1338_v13 = vpop.f32.mrf.mxu2 }
 0x348   : > { %1763 = vtanh.f32 %v1402_v20  ;;  %v1401_v21 = vadd.f32 %v1338_v13, %v834_v53  ;;  %v1142_v45 = vsel %vm1139_vm5, %v1141_v25, %v1137_v36  ;;  %v1127_v18 = vsel %vm1124_vm9, %v1126_v43, %v1122_v51 }
 0x349   : > { %v1412_v42 = vsub.f32 1.0, %v1142_v45  ;;  %v1411_v55 = vsub.f32 1.0, %v1127_v18  ;;  %v1444_v20 = vperm.slane %v3052_v8, 3  ;;  %v1443_v13 = vperm.slane %v3052_v8, 2 }
 0x34a   : > { %1765 = vtanh.f32 %v1401_v21 }
 0x34b   : > { %v1416_v0 = vmul.f32 %v2815_v2, %v1412_v42  ;;  %v1415_v21 = vmul.f32 %v2773_v6, %v1411_v55  ;;  %v1451_v40 = vmul.f32 %v2773_v6, %v1443_v13 }
 0x34e   : > { %v1764_v28 = vpop.eup %1763 }
 0x34f   : > { %v1418_v50 = vmul.f32 %v1764_v28, %v1112_v29 }
 0x350   : > { %v1766_v52 = vpop.eup %1765 }
 0x351   : > { %v1422_v49 = vadd.f32 %v1418_v50, %v1414_v15  ;;  %v1417_v62 = vmul.f32 %v1766_v52, %v1097_v41  ;;  %v1452_v41 = vmul.f32 %v2815_v2, %v1444_v20 }
 0x353   : > { %v1436_v30 = vmul.f32 %v1428_v47, %v1422_v49  ;;  %v1421_v37 = vadd.f32 %v1417_v62, %v1413_v44 }
 0x355   : > { %v1454_v3 = vadd.f32 %v1450_v48, %v1436_v30  ;;  %v1435_v26 = vmul.f32 %v1427_v17, %v1421_v37 }
 0x357   : > { %1458 = vst [vmem:[%s2195_s13 + $0x8] sm:$0xff] %v1454_v3  ;;  %v1453_v58 = vadd.f32 %v1449_v59, %v1435_v26  ;;  %v1398_v54 = vpop.f32.mrf.mxu1 }
 0x358   : > { %v1404_v5 = vadd.f32 %v1398_v54, %v990_v23 }
 0x359   : > { %1457 = vst [vmem:[%s2195_s13] sm:$0xff] %v1453_v58  ;;  %v1378_v53 = vpop.f32.mrf.mxu2 }
 0x35a   : > { %1767 = vtanh.f32 %v1404_v5  ;;  %v1403_v35 = vadd.f32 %v1378_v53, %v938_v12 }
 0x35c   : > { %1769 = vtanh.f32 %v1403_v35 }
 0x360   : > { %v1768_v1 = vpop.eup %1767 }
 0x361   : > { %v1420_v11 = vmul.f32 %v1768_v1, %v1142_v45 }
 0x362   : > { %v1770_v29 = vpop.eup %1769 }
 0x363   : > { %v1424_v63 = vadd.f32 %v1420_v11, %v1416_v0  ;;  %v1419_v14 = vmul.f32 %v1770_v29, %v1127_v18 }
 0x365   : > { %v1438_v61 = vmul.f32 %v1430_v39, %v1424_v63  ;;  %v1423_v16 = vadd.f32 %v1419_v14, %v1415_v21 }
 0x367   : > { %v1456_v60 = vadd.f32 %v1452_v41, %v1438_v61  ;;  %v1437_v28 = vmul.f32 %v1429_v22, %v1423_v16 }
 0x369   : > { %1460 = vst [vmem:[%s2195_s13 + $0x18] sm:$0xff] %v1456_v60  ;;  %v1455_v19 = vadd.f32 %v1451_v40, %v1437_v28 }
 0x36b   : > { %1459 = vst [vmem:[%s2195_s13 + $0x10] sm:$0xff] %v1455_v19 }
 0x36c PF: > { %s1636_s16 = sshll.u32 %s2071_s0, 5  ;;  %s1475_s29 = sshll.u32 %s2195_s13, 4  ;;  %s1476_s29 = int_to_ptr.vmem [resolvable:$true] %s1475_s29 }
 0x36d   : > { %s1473_s25 = scalar_lea.hbm %s3139_s8, %s1636_s16  ;;  %s1462_s18 = scalar_lea.sflag [#allocation6], %s2168_s28 }
 0x36e   : > { %s1477_s17 = sshll.u32 %s1473_s25, 4  ;;  %s1927_s0 = scalar_lea.hbm %s3139_s8, 64  ;;  %s1478_s17 = int_to_ptr.hbm [resolvable:$true] %s1477_s17 }
 0x36f   : > { %s1921_s22 = sshra.s32 %s1478_s17, 4  ;;  %s1922_s22 = int_to_ptr.hbm [resolvable:$true] %s1921_s22 }
 0x370   : > { %s1923_s2 = scalar_lea.hbm %s1922_s22, 32  ;;  %p1928_p10 = scmp.lt.s32.totalorder %s1922_s22, %s3139_s8 }
 0x371   : > { %p1924_p11 = scmp.ne.s32.totalorder %s1922_s22, %s1923_s2  ;;  %p1929_p12 = scmp.lt.s32.totalorder %s1927_s0, %s1923_s2 }
 0x373   : > { %p1925_p9 = pnand %p1924_p11, %p2138_p3  ;;  %p1930_p13 = por %p1929_p12, %p1928_p10 }
 0x375   : > { %p1926_p2 = pneg %p1925_p9 }
 0x377   : > { %p1931_p0 = pnand %p1930_p13, %p1926_p2 }
 0x379   : > { %1934 = shalt.err (!%p1931_p0)
}
 0x37a   : > { %1651 = dma.vmem_to_hbm [thread:$0]  (%p2138_p3), %s1476_s29, 512, %s1478_s17, %s1462_s18  }
 0x37b PF: > { %s1489_s28 = sand.u32 1, %s1971_s9   ;;  %p3158_p5 = scmp.ge.s32.totalorder %s1983_s12, 2 }
 0x37c   : > { %s1490_s13 = scalar_lea.sflag [#allocation6], %s1489_s28 }
 0x37d   : > { %p1668_p7 = pnand %p3158_p5, %p2085_p6 }
 0x37f   : > { %p1669_p4 = pneg %p1668_p7 }
 0x381   : > { %1966 = dma.done.wait (%p1669_p4), %s1490_s13, 512  }
 0x382   : > { %1968 = vsyncadd (%p1669_p4), %s1490_s13, 4294966784  ;;  %p31_p8 = scmp.ge.s32.totalorder %s2125_s23, 4   ;;  %s3159_s9 = smov %s1975_s10 }
 0x383   : > { %s3160_s10 = smov %s1979_s11  ;;  %s3161_s11 = smov %s2134_s26 }
 0x384   : > { %s3162_s12 = smov %s2125_s23  ;;  %33 = sbr.rel (!%p31_p8) target bundleno = 13 (0xd), region = 116 }
 0x389   :  { %1496 = vsyncpa [#allocation5], 1 }
 0x38a   :  { %1498 = vsyncpa [#allocation5 + $0x1], 1 }
 0x38b   :  { %1499 = vsyncpa [#allocation8], 1 }
 0x38c   :  { %1500 = vsyncpa [#allocation11], 1 }
 0x38d   :  { %1501 = vsyncpa [#allocation6], 1 }
 0x38e   :  { %1503 = vsyncpa [#allocation6 + $0x1], 1 }

</bundles_post_ra>
